<compile_context>
chip_gen: v5e
topology: v5e:2x2
jax: 0.10.0
libtpu: 0.0.40
codegen_flags: <defaults>
</compile_context>

<pallas_src>
import jax
import jax.numpy as jnp
from jax.experimental import pallas as pl
from jax.experimental.pallas import tpu as pltpu


_LEAKY_SLOPE = 0.01   # PyTorch F.leaky_relu default negative_slope


def _cdiv(a, b):
    return -(-a // b)


def _round_up(x, m):
    return ((x + m - 1) // m) * m


# ----------------------------- kernel body ----------------------------------


def _cos_reduce_kernel(a1_ref, a2_ref, ft_ref, out_ref):
    K = a2_ref.shape[1]
    a1 = a1_ref[...]                                             # (bn, D)

    # --- scores over K, unrolled (K is small & static); no (bn,K,D) product ---
    s = []
    for k in range(K):
        sk = jnp.sum(a1 * a2_ref[:, k, :], axis=-1, keepdims=True)   # (bn, 1)
        s.append(jnp.where(sk > 0, sk, _LEAKY_SLOPE * sk))           # leaky_relu

    # --- numerically stable softmax over K (EXACT division) -------------------
    m = s[0]
    for k in range(1, K):
        m = jnp.maximum(m, s[k])
    p = [jnp.exp(sk - m) for sk in s]
    denom = p[0]
    for k in range(1, K):
        denom = denom + p[k]
    inv = 1.0 / denom                                            # (bn, 1)

    # --- weighted aggregation: accum[n, f] = sum_k e[n, k] * ft[n, k, f] ------
    acc = (p[0] * inv) * ft_ref[:, 0, :]                         # (bn, F)
    for k in range(1, K):
        acc = acc + (p[k] * inv) * ft_ref[:, k, :]
    out_ref[...] = acc.astype(out_ref.dtype)

    # TODO(synk): attn_drop > 0 (nn.Dropout on e) omitted -- module is used with
    # attn_drop=0 here; could be added via pltpu.prng_seed + stateful_bernoulli.
    # TODO(synk): custom `aggregator` not supported; default sum over K only.


# --------------------------- block / VMEM sizing -----------------------------


def _vmem_capacity_bytes():
    try:
        return int(getattr(pltpu.get_tpu_info(), "vmem_capacity_bytes", 64 << 20))
    except Exception:
        return 64 << 20          # conservative (v7x-safe) fallback


def _per_node_vmem_bytes(K, D, Fdim, itemsize=4):
    # VMEM tiles pad the lane (last) dim to 128; count that padding.
    def pad_lane(d):
        return _round_up(max(d, 1), 128)
    return itemsize * (pad_lane(D)              # a1 row
                       + K * pad_lane(D)        # a2 row
                       + K * pad_lane(Fdim)     # ft row
                       + pad_lane(Fdim))        # out row


def _pick_block_n(N, K, D, Fdim):
    """Largest sublane-friendly node-block whose double-buffered working set
    stays under ~40% of this generation's physical VMEM."""
    per_node = _per_node_vmem_bytes(K, D, Fdim)
    budget = int(_vmem_capacity_bytes() * 0.40)
    bn = budget // (2 * per_node)          # 2 == input/output double buffering
    bn = min(bn, 8192)                     # long contiguous DMAs, amortized step cost
    # NOTE: if a future config ever drives bn below ~512 (huge K*D/K*F), prefer
    # an inner "arbitrary" grid axis over K rather than shrinking bn further.
    if bn >= N:
        if N >= 2048:
            # keep >= 2 grid steps so both v7x TensorCores get work
            return _round_up(_cdiv(N, 2), 8)
        return N                           # one full block (always a legal shape)
    bn = max(8, (bn // 128) * 128) if bn >= 128 else max(8, (bn // 8) * 8)
    # Prefer an even number of blocks (balanced across v7x's two TCs).
    nb = _cdiv(N, bn)
    if nb > 1 and nb % 2 == 1:
        bn_even = _round_up(_cdiv(N, nb + 1), 8)
        if 0 < bn_even < N:
            bn = bn_even
    return bn


# ------------------------------- wrapper -------------------------------------


def cos_reduce(a1, a2, ft, *, block_n=None):
    """CosReduce forward. a1 (N,D), a2 (N,K,D), ft (N,K,F) -> accum (N,F)."""
    N, D = a1.shape
    _, K, _ = a2.shape
    Fdim = ft.shape[-1]

    a1 = a1.astype(jnp.float32)
    a2 = a2.astype(jnp.float32)
    ft = ft.astype(jnp.float32)
    # TODO(synk): a bf16 input path (f32 accumulation in-kernel) would ~halve
    # HBM traffic on this bandwidth-bound kernel; kept f32 to match the module.

    if block_n is None:
        block_n = _pick_block_n(N, K, D, Fdim)
    n_blocks = _cdiv(N, block_n)

    # vmem_limit derived from actual block bytes + headroom, capped per chip.
    db_bytes = 2 * block_n * _per_node_vmem_bytes(K, D, Fdim)
    vmem_cap = _vmem_capacity_bytes()
    vmem_limit = max(db_bytes + (16 << 20), 32 << 20)
    vmem_limit = min(vmem_limit, int(vmem_cap * 0.75))

    return pl.pallas_call(
        _cos_reduce_kernel,
        out_shape=jax.ShapeDtypeStruct((N, Fdim), jnp.float32),
        grid_spec=pltpu.PrefetchScalarGridSpec(
            num_scalar_prefetch=0,
            grid=(n_blocks,),
            in_specs=[
                pl.BlockSpec((block_n, D), lambda i: (i, 0)),
                pl.BlockSpec((block_n, K, D), lambda i: (i, 0, 0)),
                pl.BlockSpec((block_n, K, Fdim), lambda i: (i, 0, 0)),
            ],
            out_specs=pl.BlockSpec((block_n, Fdim), lambda i: (i, 0)),
        ),
        compiler_params=pltpu.CompilerParams(
            dimension_semantics=("parallel",),
            vmem_limit_bytes=vmem_limit,
        ),
    )(a1, a2, ft)


# ------------------------------ verification ---------------------------------


def _reference(a1, a2, ft):
    s = jnp.sum(a1[:, None, :] * a2, axis=-1, keepdims=True)     # (N, K, 1)
    s = jnp.where(s > 0, s, _LEAKY_SLOPE * s)                    # leaky_relu
    e = jax.nn.softmax(s, axis=1)                                # softmax over K
    return jnp.sum(e * ft, axis=1)                               # (N, F)


def _check(N, K, D, Fdim, seed, block_n=None):
    key = jax.random.PRNGKey(seed)
    k1, k2, k3 = jax.random.split(key, 3)
    a1 = jax.random.normal(k1, (N, D), dtype=jnp.float32)
    a2 = jax.random.normal(k2, (N, K, D), dtype=jnp.float32)
    ft = jax.random.normal(k3, (N, K, Fdim), dtype=jnp.float32)

    out = jax.block_until_ready(cos_reduce(a1, a2, ft, block_n=block_n))
    ref = _reference(a1, a2, ft)
    assert out.shape == (N, Fdim), (out.shape, (N, Fdim))
    assert jnp.allclose(out, ref, atol=1e-4, rtol=1e-4), (
        "mismatch vs reference: max abs err = %g"
        % float(jnp.max(jnp.abs(out - ref))))


if __name__ == "__main__":
    # Small shapes consistent with the module: N nodes, K mailbox messages,
    # D attention dim, F feature dim.
    _check(N=16, K=8, D=32, Fdim=32, seed=0)
    # Node count that is not a multiple of 128 (single full-size block).
    _check(N=200, K=8, D=32, Fdim=32, seed=1)
    # Forced multi-block grid with a partial trailing block (exercises the
    # cdiv grid and edge-block handling; padded rows never cross nodes).
    _check(N=200, K=8, D=32, Fdim=32, seed=2, block_n=128)
    print("KERNEL_OK")
</pallas_src>

<mosaic_0001>
module attributes {stable_mosaic.version = 11 : i64} {
  func.func @_cos_reduce_kernel(%arg0: i32, %arg1: memref<16x32xf32, #tpu.memory_space<vmem>>, %arg2: memref<16x8x32xf32, #tpu.memory_space<vmem>>, %arg3: memref<16x8x32xf32, #tpu.memory_space<vmem>>, %arg4: memref<16x32xf32, #tpu.memory_space<vmem>>) attributes {dimension_semantics = [#tpu.dimension_semantics<parallel>], iteration_bounds = array<i64: 1>, scalar_prefetch = 0 : i64, scratch_operands = 0 : i64, tpu.core_type = #tpu.core_type<tc>, window_params = [{transform_indices = @transform_0, window_bounds = array<i64: 16, 32>}, {transform_indices = @transform_1, window_bounds = array<i64: 16, 8, 32>}, {transform_indices = @transform_2, window_bounds = array<i64: 16, 8, 32>}, {transform_indices = @transform_3, window_bounds = array<i64: 16, 32>}]} {
    %c0 = arith.constant 0 : index
    %c0_0 = arith.constant 0 : index
    %0 = vector.load %arg1[%c0, %c0_0] : memref<16x32xf32, #tpu.memory_space<vmem>>, vector<16x32xf32>
    %c0_1 = arith.constant 0 : index
    %c0_2 = arith.constant 0 : index
    %c0_3 = arith.constant 0 : index
    %1 = vector.load %arg2[%c0_1, %c0_2, %c0_3] : memref<16x8x32xf32, #tpu.memory_space<vmem>>, vector<16x1x32xf32>
    %2 = vector.shape_cast %1 : vector<16x1x32xf32> to vector<16x32xf32>
    %3 = arith.mulf %0, %2 : vector<16x32xf32>
    %cst = arith.constant dense<0.000000e+00> : vector<16xf32>
    %4 = vector.multi_reduction <add>, %3, %cst [1] : vector<16x32xf32> to vector<16xf32>
    %5 = vector.shape_cast %4 : vector<16xf32> to vector<16x1xf32>
    %cst_4 = arith.constant 0.000000e+00 : f32
    %6 = vector.broadcast %cst_4 : f32 to vector<16x1xf32>
    %7 = arith.cmpf ogt, %5, %6 : vector<16x1xf32>
    %cst_5 = arith.constant 0.00999999977 : f32
    %8 = vector.broadcast %cst_5 : f32 to vector<16x1xf32>
    %9 = arith.mulf %8, %5 : vector<16x1xf32>
    %10 = arith.select %7, %5, %9 : vector<16x1xi1>, vector<16x1xf32>
    %c0_6 = arith.constant 0 : index
    %c1 = arith.constant 1 : index
    %c0_7 = arith.constant 0 : index
    %11 = vector.load %arg2[%c0_6, %c1, %c0_7] : memref<16x8x32xf32, #tpu.memory_space<vmem>>, vector<16x1x32xf32>
    %12 = vector.shape_cast %11 : vector<16x1x32xf32> to vector<16x32xf32>
    %13 = arith.mulf %0, %12 : vector<16x32xf32>
    %cst_8 = arith.constant dense<0.000000e+00> : vector<16xf32>
    %14 = vector.multi_reduction <add>, %13, %cst_8 [1] : vector<16x32xf32> to vector<16xf32>
    %15 = vector.shape_cast %14 : vector<16xf32> to vector<16x1xf32>
    %cst_9 = arith.constant 0.000000e+00 : f32
    %16 = vector.broadcast %cst_9 : f32 to vector<16x1xf32>
    %17 = arith.cmpf ogt, %15, %16 : vector<16x1xf32>
    %cst_10 = arith.constant 0.00999999977 : f32
    %18 = vector.broadcast %cst_10 : f32 to vector<16x1xf32>
    %19 = arith.mulf %18, %15 : vector<16x1xf32>
    %20 = arith.select %17, %15, %19 : vector<16x1xi1>, vector<16x1xf32>
    %c0_11 = arith.constant 0 : index
    %c2 = arith.constant 2 : index
    %c0_12 = arith.constant 0 : index
    %21 = vector.load %arg2[%c0_11, %c2, %c0_12] : memref<16x8x32xf32, #tpu.memory_space<vmem>>, vector<16x1x32xf32>
    %22 = vector.shape_cast %21 : vector<16x1x32xf32> to vector<16x32xf32>
    %23 = arith.mulf %0, %22 : vector<16x32xf32>
    %cst_13 = arith.constant dense<0.000000e+00> : vector<16xf32>
    %24 = vector.multi_reduction <add>, %23, %cst_13 [1] : vector<16x32xf32> to vector<16xf32>
    %25 = vector.shape_cast %24 : vector<16xf32> to vector<16x1xf32>
    %cst_14 = arith.constant 0.000000e+00 : f32
    %26 = vector.broadcast %cst_14 : f32 to vector<16x1xf32>
    %27 = arith.cmpf ogt, %25, %26 : vector<16x1xf32>
    %cst_15 = arith.constant 0.00999999977 : f32
    %28 = vector.broadcast %cst_15 : f32 to vector<16x1xf32>
    %29 = arith.mulf %28, %25 : vector<16x1xf32>
    %30 = arith.select %27, %25, %29 : vector<16x1xi1>, vector<16x1xf32>
    %c0_16 = arith.constant 0 : index
    %c3 = arith.constant 3 : index
    %c0_17 = arith.constant 0 : index
    %31 = vector.load %arg2[%c0_16, %c3, %c0_17] : memref<16x8x32xf32, #tpu.memory_space<vmem>>, vector<16x1x32xf32>
    %32 = vector.shape_cast %31 : vector<16x1x32xf32> to vector<16x32xf32>
    %33 = arith.mulf %0, %32 : vector<16x32xf32>
    %cst_18 = arith.constant dense<0.000000e+00> : vector<16xf32>
    %34 = vector.multi_reduction <add>, %33, %cst_18 [1] : vector<16x32xf32> to vector<16xf32>
    %35 = vector.shape_cast %34 : vector<16xf32> to vector<16x1xf32>
    %cst_19 = arith.constant 0.000000e+00 : f32
    %36 = vector.broadcast %cst_19 : f32 to vector<16x1xf32>
    %37 = arith.cmpf ogt, %35, %36 : vector<16x1xf32>
    %cst_20 = arith.constant 0.00999999977 : f32
    %38 = vector.broadcast %cst_20 : f32 to vector<16x1xf32>
    %39 = arith.mulf %38, %35 : vector<16x1xf32>
    %40 = arith.select %37, %35, %39 : vector<16x1xi1>, vector<16x1xf32>
    %c0_21 = arith.constant 0 : index
    %c4 = arith.constant 4 : index
    %c0_22 = arith.constant 0 : index
    %41 = vector.load %arg2[%c0_21, %c4, %c0_22] : memref<16x8x32xf32, #tpu.memory_space<vmem>>, vector<16x1x32xf32>
    %42 = vector.shape_cast %41 : vector<16x1x32xf32> to vector<16x32xf32>
    %43 = arith.mulf %0, %42 : vector<16x32xf32>
    %cst_23 = arith.constant dense<0.000000e+00> : vector<16xf32>
    %44 = vector.multi_reduction <add>, %43, %cst_23 [1] : vector<16x32xf32> to vector<16xf32>
    %45 = vector.shape_cast %44 : vector<16xf32> to vector<16x1xf32>
    %cst_24 = arith.constant 0.000000e+00 : f32
    %46 = vector.broadcast %cst_24 : f32 to vector<16x1xf32>
    %47 = arith.cmpf ogt, %45, %46 : vector<16x1xf32>
    %cst_25 = arith.constant 0.00999999977 : f32
    %48 = vector.broadcast %cst_25 : f32 to vector<16x1xf32>
    %49 = arith.mulf %48, %45 : vector<16x1xf32>
    %50 = arith.select %47, %45, %49 : vector<16x1xi1>, vector<16x1xf32>
    %c0_26 = arith.constant 0 : index
    %c5 = arith.constant 5 : index
    %c0_27 = arith.constant 0 : index
    %51 = vector.load %arg2[%c0_26, %c5, %c0_27] : memref<16x8x32xf32, #tpu.memory_space<vmem>>, vector<16x1x32xf32>
    %52 = vector.shape_cast %51 : vector<16x1x32xf32> to vector<16x32xf32>
    %53 = arith.mulf %0, %52 : vector<16x32xf32>
    %cst_28 = arith.constant dense<0.000000e+00> : vector<16xf32>
    %54 = vector.multi_reduction <add>, %53, %cst_28 [1] : vector<16x32xf32> to vector<16xf32>
    %55 = vector.shape_cast %54 : vector<16xf32> to vector<16x1xf32>
    %cst_29 = arith.constant 0.000000e+00 : f32
    %56 = vector.broadcast %cst_29 : f32 to vector<16x1xf32>
    %57 = arith.cmpf ogt, %55, %56 : vector<16x1xf32>
    %cst_30 = arith.constant 0.00999999977 : f32
    %58 = vector.broadcast %cst_30 : f32 to vector<16x1xf32>
    %59 = arith.mulf %58, %55 : vector<16x1xf32>
    %60 = arith.select %57, %55, %59 : vector<16x1xi1>, vector<16x1xf32>
    %c0_31 = arith.constant 0 : index
    %c6 = arith.constant 6 : index
    %c0_32 = arith.constant 0 : index
    %61 = vector.load %arg2[%c0_31, %c6, %c0_32] : memref<16x8x32xf32, #tpu.memory_space<vmem>>, vector<16x1x32xf32>
    %62 = vector.shape_cast %61 : vector<16x1x32xf32> to vector<16x32xf32>
    %63 = arith.mulf %0, %62 : vector<16x32xf32>
    %cst_33 = arith.constant dense<0.000000e+00> : vector<16xf32>
    %64 = vector.multi_reduction <add>, %63, %cst_33 [1] : vector<16x32xf32> to vector<16xf32>
    %65 = vector.shape_cast %64 : vector<16xf32> to vector<16x1xf32>
    %cst_34 = arith.constant 0.000000e+00 : f32
    %66 = vector.broadcast %cst_34 : f32 to vector<16x1xf32>
    %67 = arith.cmpf ogt, %65, %66 : vector<16x1xf32>
    %cst_35 = arith.constant 0.00999999977 : f32
    %68 = vector.broadcast %cst_35 : f32 to vector<16x1xf32>
    %69 = arith.mulf %68, %65 : vector<16x1xf32>
    %70 = arith.select %67, %65, %69 : vector<16x1xi1>, vector<16x1xf32>
    %c0_36 = arith.constant 0 : index
    %c7 = arith.constant 7 : index
    %c0_37 = arith.constant 0 : index
    %71 = vector.load %arg2[%c0_36, %c7, %c0_37] : memref<16x8x32xf32, #tpu.memory_space<vmem>>, vector<16x1x32xf32>
    %72 = vector.shape_cast %71 : vector<16x1x32xf32> to vector<16x32xf32>
    %73 = arith.mulf %0, %72 : vector<16x32xf32>
    %cst_38 = arith.constant dense<0.000000e+00> : vector<16xf32>
    %74 = vector.multi_reduction <add>, %73, %cst_38 [1] : vector<16x32xf32> to vector<16xf32>
    %75 = vector.shape_cast %74 : vector<16xf32> to vector<16x1xf32>
    %cst_39 = arith.constant 0.000000e+00 : f32
    %76 = vector.broadcast %cst_39 : f32 to vector<16x1xf32>
    %77 = arith.cmpf ogt, %75, %76 : vector<16x1xf32>
    %cst_40 = arith.constant 0.00999999977 : f32
    %78 = vector.broadcast %cst_40 : f32 to vector<16x1xf32>
    %79 = arith.mulf %78, %75 : vector<16x1xf32>
    %80 = arith.select %77, %75, %79 : vector<16x1xi1>, vector<16x1xf32>
    %81 = arith.maximumf %10, %20 : vector<16x1xf32>
    %82 = arith.maximumf %81, %30 : vector<16x1xf32>
    %83 = arith.maximumf %82, %40 : vector<16x1xf32>
    %84 = arith.maximumf %83, %50 : vector<16x1xf32>
    %85 = arith.maximumf %84, %60 : vector<16x1xf32>
    %86 = arith.maximumf %85, %70 : vector<16x1xf32>
    %87 = arith.maximumf %86, %80 : vector<16x1xf32>
    %88 = arith.subf %10, %87 : vector<16x1xf32>
    %89 = math.exp %88 : vector<16x1xf32>
    %90 = arith.subf %20, %87 : vector<16x1xf32>
    %91 = math.exp %90 : vector<16x1xf32>
    %92 = arith.subf %30, %87 : vector<16x1xf32>
    %93 = math.exp %92 : vector<16x1xf32>
    %94 = arith.subf %40, %87 : vector<16x1xf32>
    %95 = math.exp %94 : vector<16x1xf32>
    %96 = arith.subf %50, %87 : vector<16x1xf32>
    %97 = math.exp %96 : vector<16x1xf32>
    %98 = arith.subf %60, %87 : vector<16x1xf32>
    %99 = math.exp %98 : vector<16x1xf32>
    %100 = arith.subf %70, %87 : vector<16x1xf32>
    %101 = math.exp %100 : vector<16x1xf32>
    %102 = arith.subf %80, %87 : vector<16x1xf32>
    %103 = math.exp %102 : vector<16x1xf32>
    %104 = arith.addf %89, %91 : vector<16x1xf32>
    %105 = arith.addf %104, %93 : vector<16x1xf32>
    %106 = arith.addf %105, %95 : vector<16x1xf32>
    %107 = arith.addf %106, %97 : vector<16x1xf32>
    %108 = arith.addf %107, %99 : vector<16x1xf32>
    %109 = arith.addf %108, %101 : vector<16x1xf32>
    %110 = arith.addf %109, %103 : vector<16x1xf32>
    %cst_41 = arith.constant 1.000000e+00 : f32
    %111 = vector.broadcast %cst_41 : f32 to vector<16x1xf32>
    %112 = arith.divf %111, %110 : vector<16x1xf32>
    %113 = arith.mulf %89, %112 : vector<16x1xf32>
    %c0_42 = arith.constant 0 : index
    %c0_43 = arith.constant 0 : index
    %c0_44 = arith.constant 0 : index
    %114 = vector.load %arg3[%c0_42, %c0_43, %c0_44] : memref<16x8x32xf32, #tpu.memory_space<vmem>>, vector<16x1x32xf32>
    %115 = vector.shape_cast %114 : vector<16x1x32xf32> to vector<16x32xf32>
    %116 = vector.broadcast %113 : vector<16x1xf32> to vector<16x32xf32>
    %117 = arith.mulf %116, %115 : vector<16x32xf32>
    %118 = arith.mulf %91, %112 : vector<16x1xf32>
    %c0_45 = arith.constant 0 : index
    %c1_46 = arith.constant 1 : index
    %c0_47 = arith.constant 0 : index
    %119 = vector.load %arg3[%c0_45, %c1_46, %c0_47] : memref<16x8x32xf32, #tpu.memory_space<vmem>>, vector<16x1x32xf32>
    %120 = vector.shape_cast %119 : vector<16x1x32xf32> to vector<16x32xf32>
    %121 = vector.broadcast %118 : vector<16x1xf32> to vector<16x32xf32>
    %122 = arith.mulf %121, %120 : vector<16x32xf32>
    %123 = arith.addf %117, %122 : vector<16x32xf32>
    %124 = arith.mulf %93, %112 : vector<16x1xf32>
    %c0_48 = arith.constant 0 : index
    %c2_49 = arith.constant 2 : index
    %c0_50 = arith.constant 0 : index
    %125 = vector.load %arg3[%c0_48, %c2_49, %c0_50] : memref<16x8x32xf32, #tpu.memory_space<vmem>>, vector<16x1x32xf32>
    %126 = vector.shape_cast %125 : vector<16x1x32xf32> to vector<16x32xf32>
    %127 = vector.broadcast %124 : vector<16x1xf32> to vector<16x32xf32>
    %128 = arith.mulf %127, %126 : vector<16x32xf32>
    %129 = arith.addf %123, %128 : vector<16x32xf32>
    %130 = arith.mulf %95, %112 : vector<16x1xf32>
    %c0_51 = arith.constant 0 : index
    %c3_52 = arith.constant 3 : index
    %c0_53 = arith.constant 0 : index
    %131 = vector.load %arg3[%c0_51, %c3_52, %c0_53] : memref<16x8x32xf32, #tpu.memory_space<vmem>>, vector<16x1x32xf32>
    %132 = vector.shape_cast %131 : vector<16x1x32xf32> to vector<16x32xf32>
    %133 = vector.broadcast %130 : vector<16x1xf32> to vector<16x32xf32>
    %134 = arith.mulf %133, %132 : vector<16x32xf32>
    %135 = arith.addf %129, %134 : vector<16x32xf32>
    %136 = arith.mulf %97, %112 : vector<16x1xf32>
    %c0_54 = arith.constant 0 : index
    %c4_55 = arith.constant 4 : index
    %c0_56 = arith.constant 0 : index
    %137 = vector.load %arg3[%c0_54, %c4_55, %c0_56] : memref<16x8x32xf32, #tpu.memory_space<vmem>>, vector<16x1x32xf32>
    %138 = vector.shape_cast %137 : vector<16x1x32xf32> to vector<16x32xf32>
    %139 = vector.broadcast %136 : vector<16x1xf32> to vector<16x32xf32>
    %140 = arith.mulf %139, %138 : vector<16x32xf32>
    %141 = arith.addf %135, %140 : vector<16x32xf32>
    %142 = arith.mulf %99, %112 : vector<16x1xf32>
    %c0_57 = arith.constant 0 : index
    %c5_58 = arith.constant 5 : index
    %c0_59 = arith.constant 0 : index
    %143 = vector.load %arg3[%c0_57, %c5_58, %c0_59] : memref<16x8x32xf32, #tpu.memory_space<vmem>>, vector<16x1x32xf32>
    %144 = vector.shape_cast %143 : vector<16x1x32xf32> to vector<16x32xf32>
    %145 = vector.broadcast %142 : vector<16x1xf32> to vector<16x32xf32>
    %146 = arith.mulf %145, %144 : vector<16x32xf32>
    %147 = arith.addf %141, %146 : vector<16x32xf32>
    %148 = arith.mulf %101, %112 : vector<16x1xf32>
    %c0_60 = arith.constant 0 : index
    %c6_61 = arith.constant 6 : index
    %c0_62 = arith.constant 0 : index
    %149 = vector.load %arg3[%c0_60, %c6_61, %c0_62] : memref<16x8x32xf32, #tpu.memory_space<vmem>>, vector<16x1x32xf32>
    %150 = vector.shape_cast %149 : vector<16x1x32xf32> to vector<16x32xf32>
    %151 = vector.broadcast %148 : vector<16x1xf32> to vector<16x32xf32>
    %152 = arith.mulf %151, %150 : vector<16x32xf32>
    %153 = arith.addf %147, %152 : vector<16x32xf32>
    %154 = arith.mulf %103, %112 : vector<16x1xf32>
    %c0_63 = arith.constant 0 : index
    %c7_64 = arith.constant 7 : index
    %c0_65 = arith.constant 0 : index
    %155 = vector.load %arg3[%c0_63, %c7_64, %c0_65] : memref<16x8x32xf32, #tpu.memory_space<vmem>>, vector<16x1x32xf32>
    %156 = vector.shape_cast %155 : vector<16x1x32xf32> to vector<16x32xf32>
    %157 = vector.broadcast %154 : vector<16x1xf32> to vector<16x32xf32>
    %158 = arith.mulf %157, %156 : vector<16x32xf32>
    %159 = arith.addf %153, %158 : vector<16x32xf32>
    %c0_66 = arith.constant 0 : index
    %c0_67 = arith.constant 0 : index
    %160 = vector.load %arg4[%c0_66, %c0_67] : memref<16x32xf32, #tpu.memory_space<vmem>>, vector<16x32xf32>
    tpu.vector_store %arg4[%c0_66, %c0_67], %159 {strides = array<i32>} : memref<16x32xf32, #tpu.memory_space<vmem>>, vector<16x32xf32>,
    return
  }
  func.func @transform_0(%arg0: i32) -> (i32, i32) {
    %c0_i32 = arith.constant 0 : i32
    %c0_i32_0 = arith.constant 0 : i32
    return %arg0, %c0_i32 : i32, i32
  }
  func.func @transform_1(%arg0: i32) -> (i32, i32, i32) {
    %c0_i32 = arith.constant 0 : i32
    %c0_i32_0 = arith.constant 0 : i32
    %c0_i32_1 = arith.constant 0 : i32
    return %arg0, %c0_i32, %c0_i32_0 : i32, i32, i32
  }
  func.func @transform_2(%arg0: i32) -> (i32, i32, i32) {
    %c0_i32 = arith.constant 0 : i32
    %c0_i32_0 = arith.constant 0 : i32
    %c0_i32_1 = arith.constant 0 : i32
    return %arg0, %c0_i32, %c0_i32_0 : i32, i32, i32
  }
  func.func @transform_3(%arg0: i32) -> (i32, i32) {
    %c0_i32 = arith.constant 0 : i32
    %c0_i32_0 = arith.constant 0 : i32
    return %arg0, %c0_i32 : i32, i32
  }
}

</mosaic_0001>

<bundles_post_ra>
// kernel: tpu_custom_call.1
= control target key start
LH: loop header
LB: loop body
LE: loop exit
PB: predicated region body
PF: predicated region fallthrough
CT: control target
= control target key end

     0   :  { %8 = vsyncpa [#allocation3], 0  ;;  %s1985_s0 = inlined_call_operand.hbm [shape: f32[16,32], index: 0, kind: input, shape index: {}]   ;;  %s1986_s1 = inlined_call_operand.hbm [shape: f32[16,8,32], index: 1, kind: input, shape index: {}]   ;;  %s1987_s2 = inlined_call_operand.hbm [shape: f32[16,8,32], index: 2, kind: input, shape index: {}]   ;;  %s1988_s3 = inlined_call_operand.hbm [shape: f32[16,32], index: 3, kind: output, shape index: {}]  }
   0x1   :  { %9 = vsyncpa [#allocation6], 0 }
   0x2   :  { %10 = vsyncpa [#allocation4], 0  ;;  %s28_s14 = sshll.u32 %s1986_s1, 4  ;;  %s1494_s15 = smov [#allocation5]   ;;  %s29_s14 = int_to_ptr.hbm [resolvable:$true] %s28_s14 }
   0x3   :  { %s30_s16 = sshll.u32 %s1494_s15, 4  ;;  %s15_s19 = sshll.u32 %s1985_s0, 4  ;;  %s31_s16 = int_to_ptr.vmem [resolvable:$true] %s30_s16  ;;  %s16_s19 = int_to_ptr.hbm [resolvable:$true] %s15_s19 }
   0x4   :  { %s1495_s20 = smov 128   ;;  %s1496_s21 = smov 8  }
   0x5   :  { %36 = dma.hbm_to_vmem [thread:$0]  %s29_s14, 2048, %s31_s16, [#allocation6], %s1495_s20, %s1495_s20, %s1496_s21  }
   0x6   :  { %s1497_s22 = smov [#allocation2]   ;;  %s41_s1 = sshll.u32 %s1987_s2, 4  ;;  %s42_s1 = int_to_ptr.hbm [resolvable:$true] %s41_s1 }
   0x7   :  { %s17_s23 = sshll.u32 %s1497_s22, 4  ;;  %s1498_s0 = smov [#allocation7]   ;;  %s18_s23 = int_to_ptr.vmem [resolvable:$true] %s17_s23 }
   0x8   :  { %23 = dma.hbm_to_vmem [thread:$0]  %s16_s19, 256, %s18_s23, [#allocation3], %s1495_s20, %s1495_s20, %s1496_s21  }
   0x9   :  { %s43_s26 = sshll.u32 %s1498_s0, 4  ;;  %s44_s26 = int_to_ptr.vmem [resolvable:$true] %s43_s26 }
   0xa   :  { %49 = dma.hbm_to_vmem [thread:$0]  %s42_s1, 2048, %s44_s26, [#allocation6], %s1495_s20, %s1495_s20, %s1496_s21  }
   0xb   :  { %1488 = dma.done.wait [#allocation3], 256  }
   0xc   :  { %1489 = vsyncadd [#allocation3], 4294967040 }
   0xd   :  { %1490 = dma.done.wait [#allocation6], 4096  }
   0xe   :  { %1491 = vsyncadd [#allocation6], 4294963200  ;;  %vm97_vm0 = vcmask 1041409   ;;  %vm100_vm1 = vcmask 1042434   ;;  %vm103_vm2 = vcmask 1043459   ;;  %vm106_vm3 = vcmask 1044484  }
   0xf   :  { %vm109_vm4 = vcmask 1045509   ;;  %vm112_vm5 = vcmask 1046534   ;;  %vm115_vm6 = vcmask 1047559   ;;  %v148_v0 = vld [vmem:[#allocation5 + $0x1] sm:$0x1]  ;;  %vm135_vm7 = vcmask 261120  }
  0x10   :  { %v149_v1 = vld [vmem:[#allocation5 + $0x9] sm:$0x1]  ;;  %v150_v2 = vld [vmem:[#allocation5 + $0x11] sm:$0x1]  ;;  %v151_v3 = vld [vmem:[#allocation5 + $0x19] sm:$0x1] }
  0x11   :  { %v152_v4 = vld [vmem:[#allocation5 + $0x21] sm:$0x1]  ;;  %v153_v5 = vld [vmem:[#allocation5 + $0x29] sm:$0x1]  ;;  %v154_v6 = vld [vmem:[#allocation5 + $0x31] sm:$0x1] }
  0x12   :  { %v155_v7 = vld [vmem:[#allocation5 + $0x39] sm:$0x1]  ;;  %v180_v8 = vrot.slane %v149_v1, 7  ;;  %v182_v9 = vrot.slane %v150_v2, 6  ;;  %v184_v10 = vrot.slane %v151_v3, 5  ;;  %v186_v11 = vrot.slane %v152_v4, 4 }
  0x13   :  { %v188_v12 = vrot.slane %v153_v5, 3  ;;  %v190_v13 = vrot.slane %v154_v6, 2  ;;  %v192_v14 = vrot.slane %v155_v7, 1  ;;  %v64_v15 = vld [vmem:[#allocation5] sm:$0x1]  ;;  %v1541_v30 = vld [vmem:[#allocation2] sm:$0xff] }
  0x14   :  { %v65_v16 = vld [vmem:[#allocation5 + $0x8] sm:$0x1]  ;;  %v181_v17 = vsel %vm97_vm0, %v180_v8, %v148_v0  ;;  %v66_v18 = vld [vmem:[#allocation5 + $0x10] sm:$0x1]  ;;  %v67_v19 = vld [vmem:[#allocation5 + $0x18] sm:$0x1] }
  0x15   :  { %v68_v20 = vld [vmem:[#allocation5 + $0x20] sm:$0x1]  ;;  %v183_v21 = vsel %vm100_vm1, %v182_v9, %v181_v17  ;;  %v69_v22 = vld [vmem:[#allocation5 + $0x28] sm:$0x1]  ;;  %v70_v23 = vld [vmem:[#allocation5 + $0x30] sm:$0x1] }
  0x16   :  { %v71_v24 = vld [vmem:[#allocation5 + $0x38] sm:$0x1]  ;;  %v185_v25 = vsel %vm103_vm2, %v184_v10, %v183_v21  ;;  %v96_v26 = vrot.slane %v65_v16, 7  ;;  %v99_v27 = vrot.slane %v66_v18, 6  ;;  %v102_v28 = vrot.slane %v67_v19, 5  ;;  %s1499_s2 = smov [#allocation8]  }
  0x17   :  { %v224_v29 = vld [vmem:[#allocation5 + $0x2] sm:$0x1]  ;;  %v187_v31 = vsel %vm106_vm3, %v186_v11, %v185_v25  ;;  %v105_v32 = vrot.slane %v68_v20, 4  ;;  %v108_v33 = vrot.slane %v69_v22, 3  ;;  %v111_v34 = vrot.slane %v70_v23, 2  ;;  %s1334_s27 = sshll.u32 %s1499_s2, 4  ;;  %s1335_s27 = int_to_ptr.vmem [resolvable:$true] %s1334_s27 }
  0x18   :  { %v225_v35 = vld [vmem:[#allocation5 + $0xa] sm:$0x1]  ;;  %v189_v36 = vsel %vm109_vm4, %v188_v12, %v187_v31  ;;  %v98_v37 = vsel %vm97_vm0, %v96_v26, %v64_v15  ;;  %v114_v38 = vrot.slane %v71_v24, 1  ;;  %v226_v39 = vld [vmem:[#allocation5 + $0x12] sm:$0x1]  ;;  %s1336_s30 = sshll.u32 %s1988_s3, 4  ;;  %s1337_s30 = int_to_ptr.hbm [resolvable:$true] %s1336_s30 }
  0x19   :  { %v227_v40 = vld [vmem:[#allocation5 + $0x1a] sm:$0x1]  ;;  %v256_v41 = vrot.slane %v225_v35, 7  ;;  %v191_v42 = vsel %vm112_vm5, %v190_v13, %v189_v36  ;;  %v101_v43 = vsel %vm100_vm1, %v99_v27, %v98_v37  ;;  %v228_v44 = vld [vmem:[#allocation5 + $0x22] sm:$0x1]  ;;  %v258_v51 = vrot.slane %v226_v39, 6 }
  0x1a   :  { %v229_v45 = vld [vmem:[#allocation5 + $0x2a] sm:$0x1]  ;;  %v230_v46 = vld [vmem:[#allocation5 + $0x32] sm:$0x1]  ;;  %v193_v47 = vsel %vm115_vm6, %v192_v14, %v191_v42  ;;  %v104_v48 = vsel %vm103_vm2, %v102_v28, %v101_v43  ;;  %v231_v49 = vld [vmem:[#allocation5 + $0x3a] sm:$0x1] }
  0x1b   :  { %v257_v50 = vsel %vm97_vm0, %v256_v41, %v224_v29  ;;  %v210_v52 = vmul.f32 %v193_v47, %v1541_v30  ;;  %v107_v53 = vsel %vm106_vm3, %v105_v32, %v104_v48  ;;  %v260_v54 = vrot.slane %v227_v40, 5  ;;  %v156_v56 = vld [vmem:[#allocation5 + $0x41] sm:$0x1]  ;;  %v157_v57 = vld [vmem:[#allocation5 + $0x49] sm:$0x1] }
  0x1c   :  { %v262_v55 = vrot.slane %v228_v44, 4  ;;  %v158_v58 = vld [vmem:[#allocation5 + $0x51] sm:$0x1]  ;;  %v110_v59 = vsel %vm109_vm4, %v108_v33, %v107_v53  ;;  %v259_v60 = vsel %vm100_vm1, %v258_v51, %v257_v50  ;;  %v264_v61 = vrot.slane %v229_v45, 3  ;;  %v159_v63 = vld [vmem:[#allocation5 + $0x59] sm:$0x1] }
  0x1d   :  { %v266_v62 = vrot.slane %v230_v46, 2  ;;  %v160_v0 = vld [vmem:[#allocation5 + $0x61] sm:$0x1]  ;;  %v212_v1 = vsel %vm135_vm7, %v210_v52, 0.0  ;;  %v113_v2 = vsel %vm112_vm5, %v111_v34, %v110_v59  ;;  %v261_v3 = vsel %vm103_vm2, %v260_v54, %v259_v60  ;;  %v161_v5 = vld [vmem:[#allocation5 + $0x69] sm:$0x1] }
  0x1e   :  { %v268_v4 = vrot.slane %v231_v49, 1  ;;  %v162_v6 = vld [vmem:[#allocation5 + $0x71] sm:$0x1]  ;;  %213 = vadd.xlane.f32.xlu1 %v212_v1  ;;  %v116_v7 = vsel %vm115_vm6, %v114_v38, %v113_v2  ;;  %v263_v8 = vsel %vm106_vm3, %v262_v55, %v261_v3  ;;  %v163_v9 = vld [vmem:[#allocation5 + $0x79] sm:$0x1]  ;;  %v194_v10 = vrot.slane %v157_v57, 7 }
  0x1f   :  { %v196_v11 = vrot.slane %v158_v58, 6  ;;  %v133_v12 = vmul.f32 %v116_v7, %v1541_v30  ;;  %v265_v13 = vsel %vm109_vm4, %v264_v61, %v263_v8  ;;  %v198_v14 = vrot.slane %v159_v63, 5  ;;  %v72_v16 = vld [vmem:[#allocation5 + $0x40] sm:$0x1]  ;;  %v73_v17 = vld [vmem:[#allocation5 + $0x48] sm:$0x1] }
  0x20   :  { %v200_v15 = vrot.slane %v160_v0, 4  ;;  %v74_v18 = vld [vmem:[#allocation5 + $0x50] sm:$0x1]  ;;  %v267_v19 = vsel %vm112_vm5, %v266_v62, %v265_v13  ;;  %v195_v20 = vsel %vm97_vm0, %v194_v10, %v156_v56  ;;  %v202_v21 = vrot.slane %v161_v5, 3  ;;  %v75_v23 = vld [vmem:[#allocation5 + $0x58] sm:$0x1] }
  0x21   :  { %v204_v22 = vrot.slane %v162_v6, 2  ;;  %v76_v24 = vld [vmem:[#allocation5 + $0x60] sm:$0x1]  ;;  %v136_v25 = vsel %vm135_vm7, %v133_v12, 0.0  ;;  %v269_v26 = vsel %vm115_vm6, %v268_v4, %v267_v19  ;;  %v197_v27 = vsel %vm100_vm1, %v196_v11, %v195_v20  ;;  %v77_v29 = vld [vmem:[#allocation5 + $0x68] sm:$0x1] }
  0x22   :  { %v206_v28 = vrot.slane %v163_v9, 1  ;;  %v78_v31 = vld [vmem:[#allocation5 + $0x70] sm:$0x1]  ;;  %137 = vadd.xlane.f32.xlu0 %v136_v25  ;;  %v286_v32 = vmul.f32 %v269_v26, %v1541_v30  ;;  %v199_v33 = vsel %vm103_vm2, %v198_v14, %v197_v27  ;;  %v79_v34 = vld [vmem:[#allocation5 + $0x78] sm:$0x1]  ;;  %v117_v35 = vrot.slane %v73_v17, 7 }
  0x23   :  { %v119_v36 = vrot.slane %v74_v18, 6  ;;  %v232_v37 = vld [vmem:[#allocation5 + $0x42] sm:$0x1]  ;;  %v1569_v38 = vld [vmem:[#allocation2 + $0x8] sm:$0xff]  ;;  %v201_v39 = vsel %vm106_vm3, %v200_v15, %v199_v33  ;;  %v121_v40 = vrot.slane %v75_v23, 5  ;;  %v123_v41 = vrot.slane %v76_v24, 4 }
  0x24   :  { %v125_v42 = vrot.slane %v77_v29, 3  ;;  %v233_v43 = vld [vmem:[#allocation5 + $0x4a] sm:$0x1]  ;;  %v288_v44 = vsel %vm135_vm7, %v286_v32, 0.0  ;;  %v203_v45 = vsel %vm109_vm4, %v202_v21, %v201_v39  ;;  %v118_v46 = vsel %vm97_vm0, %v117_v35, %v72_v16  ;;  %v234_v48 = vld [vmem:[#allocation5 + $0x52] sm:$0x1] }
  0x25   :  { %v127_v47 = vrot.slane %v78_v31, 2  ;;  %v235_v49 = vld [vmem:[#allocation5 + $0x5a] sm:$0x1]  ;;  %289 = vadd.xlane.f32.xlu2 %v288_v44  ;;  %v205_v50 = vsel %vm112_vm5, %v204_v22, %v203_v45  ;;  %v120_v51 = vsel %vm100_vm1, %v119_v36, %v118_v46  ;;  %v129_v52 = vrot.slane %v79_v34, 1  ;;  %v236_v53 = vld [vmem:[#allocation5 + $0x62] sm:$0x1] }
  0x26   :  { %v237_v54 = vld [vmem:[#allocation5 + $0x6a] sm:$0x1]  ;;  %v270_v55 = vrot.slane %v233_v43, 7  ;;  %v207_v56 = vsel %vm115_vm6, %v206_v28, %v205_v50  ;;  %v122_v57 = vsel %vm103_vm2, %v121_v40, %v120_v51  ;;  %v238_v58 = vld [vmem:[#allocation5 + $0x72] sm:$0x1]  ;;  %v272_v60 = vrot.slane %v234_v48, 6 }
  0x27   :  { %v239_v59 = vld [vmem:[#allocation5 + $0x7a] sm:$0x1]  ;;  %v274_v61 = vrot.slane %v235_v49, 5  ;;  %v211_v62 = vmul.f32 %v207_v56, %v1569_v38  ;;  %v124_v63 = vsel %vm106_vm3, %v123_v41, %v122_v57  ;;  %v276_v1 = vrot.slane %v236_v53, 4  ;;  %v308_v2 = vld [vmem:[#allocation5 + $0x43] sm:$0x1] }
  0x28   :  { %v271_v0 = vsel %vm97_vm0, %v270_v55, %v232_v37  ;;  %v309_v3 = vld [vmem:[#allocation5 + $0x4b] sm:$0x1]  ;;  %v126_v4 = vsel %vm109_vm4, %v125_v42, %v124_v63  ;;  %v278_v6 = vrot.slane %v237_v54, 3  ;;  %v280_v7 = vrot.slane %v238_v58, 2  ;;  %v310_v8 = vld [vmem:[#allocation5 + $0x53] sm:$0x1] }
  0x29   :  { %v273_v5 = vsel %vm100_vm1, %v272_v60, %v271_v0  ;;  %v311_v9 = vld [vmem:[#allocation5 + $0x5b] sm:$0x1]  ;;  %v215_v10 = vsel %vm135_vm7, %v211_v62, 0.0  ;;  %v128_v11 = vsel %vm112_vm5, %v127_v47, %v126_v4  ;;  %v282_v13 = vrot.slane %v239_v59, 1  ;;  %v312_v14 = vld [vmem:[#allocation5 + $0x63] sm:$0x1] }
  0x2a   :  { %v275_v12 = vsel %vm103_vm2, %v274_v61, %v273_v5  ;;  %v313_v15 = vld [vmem:[#allocation5 + $0x6b] sm:$0x1]  ;;  %216 = vadd.xlane.f32.xlu1 %v215_v10  ;;  %v130_v16 = vsel %vm115_vm6, %v129_v52, %v128_v11  ;;  %v314_v18 = vld [vmem:[#allocation5 + $0x73] sm:$0x1]  ;;  %v315_v19 = vld [vmem:[#allocation5 + $0x7b] sm:$0x1] }
  0x2b   :  { %v277_v17 = vsel %vm106_vm3, %v276_v1, %v275_v12  ;;  %v346_v20 = vrot.slane %v309_v3, 7  ;;  %v348_v21 = vrot.slane %v310_v8, 6  ;;  %v134_v22 = vmul.f32 %v130_v16, %v1569_v38  ;;  %v300_v26 = vld [vmem:[#allocation5 + $0x3] sm:$0x1]  ;;  %v301_v27 = vld [vmem:[#allocation5 + $0xb] sm:$0x1] }
  0x2c   :  { %v279_v23 = vsel %vm109_vm4, %v278_v6, %v277_v17  ;;  %v350_v24 = vrot.slane %v311_v9, 5  ;;  %v352_v25 = vrot.slane %v312_v14, 4  ;;  %v354_v31 = vrot.slane %v313_v15, 3  ;;  %v302_v33 = vld [vmem:[#allocation5 + $0x13] sm:$0x1] }
  0x2d   :  { %v281_v28 = vsel %vm112_vm5, %v280_v7, %v279_v23  ;;  %v347_v29 = vsel %vm97_vm0, %v346_v20, %v308_v2  ;;  %v356_v32 = vrot.slane %v314_v18, 2  ;;  %v303_v34 = vld [vmem:[#allocation5 + $0x1b] sm:$0x1]  ;;  %v139_v35 = vsel %vm135_vm7, %v134_v22, 0.0  ;;  %v304_v40 = vld [vmem:[#allocation5 + $0x23] sm:$0x1] }
  0x2e   :  { %v283_v36 = vsel %vm115_vm6, %v282_v13, %v281_v28  ;;  %v349_v37 = vsel %vm100_vm1, %v348_v21, %v347_v29  ;;  %v358_v39 = vrot.slane %v315_v19, 1  ;;  %v305_v41 = vld [vmem:[#allocation5 + $0x2b] sm:$0x1]  ;;  %140 = vadd.xlane.f32.xlu0 %v139_v35  ;;  %v306_v44 = vld [vmem:[#allocation5 + $0x33] sm:$0x1]  ;;  %v332_v46 = vrot.slane %v301_v27, 7 }
  0x2f   :  { %v287_v42 = vmul.f32 %v283_v36, %v1569_v38  ;;  %v351_v43 = vsel %vm103_vm2, %v350_v24, %v349_v37  ;;  %v307_v45 = vld [vmem:[#allocation5 + $0x3b] sm:$0x1]  ;;  %v334_v47 = vrot.slane %v302_v33, 6  ;;  %v336_v49 = vrot.slane %v303_v34, 5  ;;  %v376_v52 = vld [vmem:[#allocation5 + $0x4] sm:$0x1] }
  0x30   :  { %v353_v48 = vsel %vm106_vm3, %v352_v25, %v351_v43  ;;  %v338_v50 = vrot.slane %v304_v40, 4  ;;  %v340_v51 = vrot.slane %v305_v41, 3  ;;  %v333_v55 = vsel %vm97_vm0, %v332_v46, %v300_v26  ;;  %v377_v57 = vld [vmem:[#allocation5 + $0xc] sm:$0x1]  ;;  %v378_v58 = vld [vmem:[#allocation5 + $0x14] sm:$0x1] }
  0x31   :  { %v291_v53 = vsel %vm135_vm7, %v287_v42, 0.0  ;;  %v355_v54 = vsel %vm109_vm4, %v354_v31, %v353_v48  ;;  %v342_v56 = vrot.slane %v306_v44, 2  ;;  %v335_v60 = vsel %vm100_vm1, %v334_v47, %v333_v55  ;;  %v379_v62 = vld [vmem:[#allocation5 + $0x1c] sm:$0x1]  ;;  %v380_v63 = vld [vmem:[#allocation5 + $0x24] sm:$0x1] }
  0x32   :  { %292 = vadd.xlane.f32.xlu2 %v291_v53  ;;  %v357_v59 = vsel %vm112_vm5, %v356_v32, %v355_v54  ;;  %v344_v61 = vrot.slane %v307_v45, 1  ;;  %v408_v0 = vrot.slane %v377_v57, 7  ;;  %v337_v2 = vsel %vm103_vm2, %v336_v49, %v335_v60  ;;  %v381_v3 = vld [vmem:[#allocation5 + $0x2c] sm:$0x1]  ;;  %v382_v4 = vld [vmem:[#allocation5 + $0x34] sm:$0x1] }
  0x33   :  { %v359_v1 = vsel %vm115_vm6, %v358_v39, %v357_v59  ;;  %v383_v5 = vld [vmem:[#allocation5 + $0x3c] sm:$0x1]  ;;  %v339_v7 = vsel %vm106_vm3, %v338_v50, %v337_v2  ;;  %v410_v9 = vrot.slane %v378_v58, 6  ;;  %v452_v10 = vld [vmem:[#allocation5 + $0x5] sm:$0x1]  ;;  %v412_v13 = vrot.slane %v379_v62, 5 }
  0x34   :  { %v363_v6 = vmul.f32 %v359_v1, %v1569_v38  ;;  %v409_v8 = vsel %vm97_vm0, %v408_v0, %v376_v52  ;;  %v453_v11 = vld [vmem:[#allocation5 + $0xd] sm:$0x1]  ;;  %v341_v12 = vsel %vm109_vm4, %v340_v51, %v339_v7  ;;  %v414_v14 = vrot.slane %v380_v63, 4  ;;  %v454_v16 = vld [vmem:[#allocation5 + $0x15] sm:$0x1] }
  0x35   :  { %v416_v15 = vrot.slane %v381_v3, 3  ;;  %v343_v18 = vsel %vm112_vm5, %v342_v56, %v341_v12  ;;  %v411_v19 = vsel %vm100_vm1, %v410_v9, %v409_v8  ;;  %v418_v20 = vrot.slane %v382_v4, 2  ;;  %v455_v21 = vld [vmem:[#allocation5 + $0x1d] sm:$0x1]  ;;  %v456_v22 = vld [vmem:[#allocation5 + $0x25] sm:$0x1] }
  0x36   :  { %v367_v17 = vsel %vm135_vm7, %v363_v6, 0.0  ;;  %v345_v23 = vsel %vm115_vm6, %v344_v61, %v343_v18  ;;  %v413_v24 = vsel %vm103_vm2, %v412_v13, %v411_v19  ;;  %v420_v25 = vrot.slane %v383_v5, 1  ;;  %v457_v26 = vld [vmem:[#allocation5 + $0x2d] sm:$0x1]  ;;  %v458_v27 = vld [vmem:[#allocation5 + $0x35] sm:$0x1] }
  0x37   :  { %368 = vadd.xlane.f32.xlu1 %v367_v17  ;;  %v484_v28 = vrot.slane %v453_v11, 7  ;;  %v362_v29 = vmul.f32 %v345_v23, %v1541_v30  ;;  %v415_v31 = vsel %vm106_vm3, %v414_v14, %v413_v24  ;;  %v459_v32 = vld [vmem:[#allocation5 + $0x3d] sm:$0x1]  ;;  %v486_v33 = vrot.slane %v454_v16, 6  ;;  %v384_v35 = vld [vmem:[#allocation5 + $0x44] sm:$0x1] }
  0x38   :  { %v488_v34 = vrot.slane %v455_v21, 5  ;;  %v417_v36 = vsel %vm109_vm4, %v416_v15, %v415_v31  ;;  %v490_v39 = vrot.slane %v456_v22, 4  ;;  %v492_v40 = vrot.slane %v457_v26, 3  ;;  %v385_v41 = vld [vmem:[#allocation5 + $0x4c] sm:$0x1] }
  0x39   :  { %v485_v37 = vsel %vm97_vm0, %v484_v28, %v452_v10  ;;  %v386_v42 = vld [vmem:[#allocation5 + $0x54] sm:$0x1]  ;;  %v364_v43 = vsel %vm135_vm7, %v362_v29, 0.0  ;;  %v419_v44 = vsel %vm112_vm5, %v418_v20, %v417_v36  ;;  %v494_v46 = vrot.slane %v458_v27, 2  ;;  %v387_v47 = vld [vmem:[#allocation5 + $0x5c] sm:$0x1] }
  0x3a   :  { %v487_v45 = vsel %vm100_vm1, %v486_v33, %v485_v37  ;;  %v388_v48 = vld [vmem:[#allocation5 + $0x64] sm:$0x1]  ;;  %365 = vadd.xlane.f32.xlu0 %v364_v43  ;;  %v421_v49 = vsel %vm115_vm6, %v420_v25, %v419_v44  ;;  %v496_v51 = vrot.slane %v459_v32, 1  ;;  %v389_v52 = vld [vmem:[#allocation5 + $0x6c] sm:$0x1]  ;;  %v422_v54 = vrot.slane %v385_v41, 7 }
  0x3b   :  { %v489_v50 = vsel %vm103_vm2, %v488_v34, %v487_v45  ;;  %v390_v53 = vld [vmem:[#allocation5 + $0x74] sm:$0x1]  ;;  %v438_v55 = vmul.f32 %v421_v49, %v1541_v30  ;;  %v391_v57 = vld [vmem:[#allocation5 + $0x7c] sm:$0x1]  ;;  %v424_v58 = vrot.slane %v386_v42, 6  ;;  %v426_v59 = vrot.slane %v387_v47, 5 }
  0x3c   :  { %v491_v56 = vsel %vm106_vm3, %v490_v39, %v489_v50  ;;  %v460_v60 = vld [vmem:[#allocation5 + $0x45] sm:$0x1]  ;;  %v423_v62 = vsel %vm97_vm0, %v422_v54, %v384_v35  ;;  %v428_v63 = vrot.slane %v388_v48, 4  ;;  %v430_v0 = vrot.slane %v389_v52, 3  ;;  %v461_v1 = vld [vmem:[#allocation5 + $0x4d] sm:$0x1] }
  0x3d   :  { %v493_v61 = vsel %vm109_vm4, %v492_v40, %v491_v56  ;;  %v462_v2 = vld [vmem:[#allocation5 + $0x55] sm:$0x1]  ;;  %v440_v3 = vsel %vm135_vm7, %v438_v55, 0.0  ;;  %v425_v5 = vsel %vm100_vm1, %v424_v58, %v423_v62  ;;  %v432_v6 = vrot.slane %v390_v53, 2  ;;  %v463_v7 = vld [vmem:[#allocation5 + $0x5d] sm:$0x1] }
  0x3e   :  { %v495_v4 = vsel %vm112_vm5, %v494_v46, %v493_v61  ;;  %v464_v8 = vld [vmem:[#allocation5 + $0x65] sm:$0x1]  ;;  %441 = vadd.xlane.f32.xlu2 %v440_v3  ;;  %v427_v10 = vsel %vm103_vm2, %v426_v59, %v425_v5  ;;  %v434_v11 = vrot.slane %v391_v57, 1  ;;  %v465_v12 = vld [vmem:[#allocation5 + $0x6d] sm:$0x1]  ;;  %v498_v14 = vrot.slane %v461_v1, 7 }
  0x3f   :  { %v497_v9 = vsel %vm115_vm6, %v496_v51, %v495_v4  ;;  %v466_v13 = vld [vmem:[#allocation5 + $0x75] sm:$0x1]  ;;  %v429_v16 = vsel %vm106_vm3, %v428_v63, %v427_v10  ;;  %v467_v17 = vld [vmem:[#allocation5 + $0x7d] sm:$0x1]  ;;  %v500_v18 = vrot.slane %v462_v2, 6  ;;  %v502_v19 = vrot.slane %v463_v7, 5 }
  0x40   :  { %v514_v15 = vmul.f32 %v497_v9, %v1541_v30  ;;  %v536_v20 = vld [vmem:[#allocation5 + $0x46] sm:$0x1]  ;;  %v431_v21 = vsel %vm109_vm4, %v430_v0, %v429_v16  ;;  %v499_v22 = vsel %vm97_vm0, %v498_v14, %v460_v60  ;;  %v504_v23 = vrot.slane %v464_v8, 4  ;;  %v537_v25 = vld [vmem:[#allocation5 + $0x4e] sm:$0x1] }
  0x41   :  { %v506_v24 = vrot.slane %v465_v12, 3  ;;  %v538_v26 = vld [vmem:[#allocation5 + $0x56] sm:$0x1]  ;;  %v433_v28 = vsel %vm112_vm5, %v432_v6, %v431_v21  ;;  %v501_v29 = vsel %vm100_vm1, %v500_v18, %v499_v22  ;;  %v508_v31 = vrot.slane %v466_v13, 2  ;;  %v539_v32 = vld [vmem:[#allocation5 + $0x5e] sm:$0x1] }
  0x42   :  { %v516_v27 = vsel %vm135_vm7, %v514_v15, 0.0  ;;  %v540_v33 = vld [vmem:[#allocation5 + $0x66] sm:$0x1]  ;;  %v435_v34 = vsel %vm115_vm6, %v434_v11, %v433_v28  ;;  %v503_v35 = vsel %vm103_vm2, %v502_v19, %v501_v29  ;;  %v510_v36 = vrot.slane %v467_v17, 1  ;;  %v541_v37 = vld [vmem:[#allocation5 + $0x6e] sm:$0x1] }
  0x43   :  { %517 = vadd.xlane.f32.xlu1 %v516_v27  ;;  %v542_v39 = vld [vmem:[#allocation5 + $0x76] sm:$0x1]  ;;  %v574_v40 = vrot.slane %v537_v25, 7  ;;  %v439_v41 = vmul.f32 %v435_v34, %v1569_v38  ;;  %v505_v42 = vsel %vm106_vm3, %v504_v23, %v503_v35  ;;  %v543_v43 = vld [vmem:[#allocation5 + $0x7e] sm:$0x1]  ;;  %v576_v44 = vrot.slane %v538_v26, 6 }
  0x44   :  { %v578_v45 = vrot.slane %v539_v32, 5  ;;  %v528_v46 = vld [vmem:[#allocation5 + $0x6] sm:$0x1]  ;;  %v507_v47 = vsel %vm109_vm4, %v506_v24, %v505_v42  ;;  %v580_v49 = vrot.slane %v540_v33, 4  ;;  %v582_v50 = vrot.slane %v541_v37, 3 }
  0x45   :  { %v575_v48 = vsel %vm97_vm0, %v574_v40, %v536_v20  ;;  %v529_v51 = vld [vmem:[#allocation5 + $0xe] sm:$0x1]  ;;  %v530_v52 = vld [vmem:[#allocation5 + $0x16] sm:$0x1]  ;;  %v443_v53 = vsel %vm135_vm7, %v439_v41, 0.0  ;;  %v509_v54 = vsel %vm112_vm5, %v508_v31, %v507_v47  ;;  %v584_v56 = vrot.slane %v542_v39, 2 }
  0x46   :  { %v577_v55 = vsel %vm100_vm1, %v576_v44, %v575_v48  ;;  %v531_v57 = vld [vmem:[#allocation5 + $0x1e] sm:$0x1]  ;;  %v532_v58 = vld [vmem:[#allocation5 + $0x26] sm:$0x1]  ;;  %444 = vadd.xlane.f32.xlu0 %v443_v53  ;;  %v511_v59 = vsel %vm115_vm6, %v510_v36, %v509_v54  ;;  %v586_v61 = vrot.slane %v543_v43, 1  ;;  %v560_v0 = vrot.slane %v529_v51, 7 }
  0x47   :  { %v579_v60 = vsel %vm103_vm2, %v578_v45, %v577_v55  ;;  %v533_v62 = vld [vmem:[#allocation5 + $0x2e] sm:$0x1]  ;;  %v534_v63 = vld [vmem:[#allocation5 + $0x36] sm:$0x1]  ;;  %v515_v1 = vmul.f32 %v511_v59, %v1569_v38  ;;  %v535_v3 = vld [vmem:[#allocation5 + $0x3e] sm:$0x1] }
  0x48   :  { %v581_v2 = vsel %vm106_vm3, %v580_v49, %v579_v60  ;;  %v562_v4 = vrot.slane %v530_v52, 6  ;;  %v564_v5 = vrot.slane %v531_v57, 5  ;;  %v604_v6 = vld [vmem:[#allocation5 + $0x7] sm:$0x1]  ;;  %v561_v8 = vsel %vm97_vm0, %v560_v0, %v528_v46  ;;  %v605_v11 = vld [vmem:[#allocation5 + $0xf] sm:$0x1] }
  0x49   :  { %v583_v7 = vsel %vm109_vm4, %v582_v50, %v581_v2  ;;  %v566_v9 = vrot.slane %v532_v58, 4  ;;  %v568_v10 = vrot.slane %v533_v62, 3  ;;  %v606_v12 = vld [vmem:[#allocation5 + $0x17] sm:$0x1]  ;;  %v519_v13 = vsel %vm135_vm7, %v515_v1, 0.0 }
  0x4a   :  { %v585_v14 = vsel %vm112_vm5, %v584_v56, %v583_v7  ;;  %v563_v15 = vsel %vm100_vm1, %v562_v4, %v561_v8  ;;  %v570_v16 = vrot.slane %v534_v63, 2  ;;  %v607_v17 = vld [vmem:[#allocation5 + $0x1f] sm:$0x1]  ;;  %v608_v18 = vld [vmem:[#allocation5 + $0x27] sm:$0x1]  ;;  %520 = vadd.xlane.f32.xlu2 %v519_v13  ;;  %v572_v21 = vrot.slane %v535_v3, 1 }
  0x4b   :  { %v587_v19 = vsel %vm115_vm6, %v586_v61, %v585_v14  ;;  %v565_v20 = vsel %vm103_vm2, %v564_v5, %v563_v15  ;;  %v609_v22 = vld [vmem:[#allocation5 + $0x2f] sm:$0x1]  ;;  %v610_v23 = vld [vmem:[#allocation5 + $0x37] sm:$0x1]  ;;  %v636_v24 = vrot.slane %v605_v11, 7  ;;  %v638_v28 = vrot.slane %v606_v12, 6 }
  0x4c   :  { %v591_v25 = vmul.f32 %v587_v19, %v1569_v38  ;;  %v567_v26 = vsel %vm106_vm3, %v566_v9, %v565_v20  ;;  %v611_v27 = vld [vmem:[#allocation5 + $0x3f] sm:$0x1]  ;;  %v640_v29 = vrot.slane %v607_v17, 5  ;;  %v612_v31 = vld [vmem:[#allocation5 + $0x47] sm:$0x1]  ;;  %v642_v34 = vrot.slane %v608_v18, 4 }
  0x4d   :  { %v569_v32 = vsel %vm109_vm4, %v568_v10, %v567_v26  ;;  %v637_v33 = vsel %vm97_vm0, %v636_v24, %v604_v6  ;;  %v644_v35 = vrot.slane %v609_v22, 3  ;;  %v613_v36 = vld [vmem:[#allocation5 + $0x4f] sm:$0x1]  ;;  %v614_v37 = vld [vmem:[#allocation5 + $0x57] sm:$0x1]  ;;  %v646_v42 = vrot.slane %v610_v23, 2 }
  0x4e   :  { %v595_v39 = vsel %vm135_vm7, %v591_v25, 0.0  ;;  %v571_v40 = vsel %vm112_vm5, %v570_v16, %v569_v32  ;;  %v639_v41 = vsel %vm100_vm1, %v638_v28, %v637_v33  ;;  %v615_v43 = vld [vmem:[#allocation5 + $0x5f] sm:$0x1]  ;;  %v616_v44 = vld [vmem:[#allocation5 + $0x67] sm:$0x1]  ;;  %v648_v47 = vrot.slane %v611_v27, 1 }
  0x4f   :  { %596 = vadd.xlane.f32.xlu1 %v595_v39  ;;  %v573_v45 = vsel %vm115_vm6, %v572_v21, %v571_v40  ;;  %v641_v46 = vsel %vm103_vm2, %v640_v29, %v639_v41  ;;  %v617_v48 = vld [vmem:[#allocation5 + $0x6f] sm:$0x1]  ;;  %v618_v49 = vld [vmem:[#allocation5 + $0x77] sm:$0x1]  ;;  %v650_v50 = vrot.slane %v613_v36, 7  ;;  %v652_v54 = vrot.slane %v614_v37, 6 }
  0x50   :  { %v590_v51 = vmul.f32 %v573_v45, %v1541_v30  ;;  %v643_v52 = vsel %vm106_vm3, %v642_v34, %v641_v46  ;;  %v619_v53 = vld [vmem:[#allocation5 + $0x7f] sm:$0x1]  ;;  %v654_v55 = vrot.slane %v615_v43, 5  ;;  %v656_v58 = vrot.slane %v616_v44, 4 }
  0x51   :  { %v645_v56 = vsel %vm109_vm4, %v644_v35, %v643_v52  ;;  %v651_v57 = vsel %vm97_vm0, %v650_v50, %v612_v31  ;;  %v658_v59 = vrot.slane %v617_v48, 3  ;;  %v660_v63 = vrot.slane %v618_v49, 2 }
  0x52   :  { %v592_v60 = vsel %vm135_vm7, %v590_v51, 0.0  ;;  %v647_v61 = vsel %vm112_vm5, %v646_v42, %v645_v56  ;;  %v653_v62 = vsel %vm100_vm1, %v652_v54, %v651_v57  ;;  %v662_v2 = vrot.slane %v619_v53, 1 }
  0x53   :  { %593 = vadd.xlane.f32.xlu0 %v592_v60  ;;  %v649_v0 = vsel %vm115_vm6, %v648_v47, %v647_v61  ;;  %v655_v1 = vsel %vm103_vm2, %v654_v55, %v653_v62 }
  0x54   :  { %v666_v3 = vmul.f32 %v649_v0, %v1541_v30  ;;  %v657_v4 = vsel %vm106_vm3, %v656_v58, %v655_v1 }
  0x55   :  { %v659_v5 = vsel %vm109_vm4, %v658_v59, %v657_v4 }
  0x56   :  { %v668_v6 = vsel %vm135_vm7, %v666_v3, 0.0  ;;  %v661_v7 = vsel %vm112_vm5, %v660_v63, %v659_v5 }
  0x57   :  { %669 = vadd.xlane.f32.xlu2 %v668_v6  ;;  %v663_v8 = vsel %vm115_vm6, %v662_v2, %v661_v7 }
  0x58   :  { %v667_v9 = vmul.f32 %v663_v8, %v1569_v38 }
  0x5a   :  { %v671_v10 = vsel %vm135_vm7, %v667_v9, 0.0 }
  0x5b   :  { %672 = vadd.xlane.f32.xlu0 %v671_v10 }
  0x91   :  { %v214_v12 = vpop.xlane.xlu1 %213 }
  0x92   :  { %v220_v18 = vmul.f32 0.01, %v214_v12  ;;  %vm218_vm8 = vcmp.gt.f32.partialorder %v214_v12, 0.0 }
  0x94   :  { %v1686_v21 = vsel %vm218_vm8, %v214_v12, %v220_v18 }
  0x95   :  { %v138_v11 = vpop.xlane.xlu0 %137 }
  0x96   :  { %v144_v19 = vmul.f32 0.01, %v138_v11  ;;  %vm142_vm9 = vcmp.gt.f32.partialorder %v138_v11, 0.0 }
  0x98   :  { %v290_v13 = vpop.xlane.xlu2 %289  ;;  %v1688_v22 = vsel %vm142_vm9, %v138_v11, %v144_v19 }
  0x99   :  { %v296_v38 = vmul.f32 0.01, %v290_v13  ;;  %vm294_vm10 = vcmp.gt.f32.partialorder %v290_v13, 0.0  ;;  %v680_v23 = vmax.f32 %v1688_v22, %v1686_v21 }
  0x9b   :  { %v1692_v25 = vsel %vm294_vm10, %v290_v13, %v296_v38 }
  0x9c   :  { %v682_v31 = vmax.f32 %v680_v23, %v1692_v25 }
  0x9d   :  { %v217_v14 = vpop.xlane.xlu1 %216 }
  0x9e   :  { %v221_v26 = vmul.f32 0.01, %v217_v14  ;;  %vm219_vm12 = vcmp.gt.f32.partialorder %v217_v14, 0.0 }
  0xa0   :  { %v1695_v34 = vsel %vm219_vm12, %v217_v14, %v221_v26 }
  0xa1   :  { %v141_v30 = vpop.xlane.xlu0 %140 }
  0xa2   :  { %v145_v27 = vmul.f32 0.01, %v141_v30  ;;  %vm143_vm13 = vcmp.gt.f32.partialorder %v141_v30, 0.0 }
  0xa4   :  { %v1697_v35 = vsel %vm143_vm13, %v141_v30, %v145_v27 }
  0xa5   :  { %v293_v15 = vpop.xlane.xlu2 %292  ;;  %v681_v42 = vmax.f32 %v1697_v35, %v1695_v34 }
  0xa6   :  { %v297_v36 = vmul.f32 0.01, %v293_v15  ;;  %vm295_vm15 = vcmp.gt.f32.partialorder %v293_v15, 0.0 }
  0xa8   :  { %v1701_v44 = vsel %vm295_vm15, %v293_v15, %v297_v36 }
  0xa9   :  { %v683_v50 = vmax.f32 %v681_v42, %v1701_v44  ;;  %v790_v42 = vld [vmem:[#allocation7 + $0x10] sm:$0x1] }
  0xaa   :  { %v369_v17 = vpop.xlane.xlu1 %368 }
  0xab   :  { %v373_v40 = vmul.f32 0.01, %v369_v17  ;;  %vm371_vm9 = vcmp.gt.f32.partialorder %v369_v17, 0.0 }
  0xad   :  { %v366_v16 = vpop.xlane.xlu0 %365  ;;  %v1703_v47 = vsel %vm371_vm9, %v369_v17, %v373_v40 }
  0xae   :  { %v372_v24 = vmul.f32 0.01, %v366_v16  ;;  %vm370_vm11 = vcmp.gt.f32.partialorder %v366_v16, 0.0  ;;  %v685_v56 = vmax.f32 %v683_v50, %v1703_v47 }
  0xb0   :  { %v374_v32 = vsel %vm370_vm11, %v366_v16, %v372_v24 }
  0xb1   :  { %v442_v20 = vpop.xlane.xlu2 %441  ;;  %v684_v41 = vmax.f32 %v682_v31, %v374_v32 }
  0xb2   :  { %v448_v33 = vmul.f32 0.01, %v442_v20  ;;  %vm446_vm14 = vcmp.gt.f32.partialorder %v442_v20, 0.0 }
  0xb4   :  { %v450_v43 = vsel %vm446_vm14, %v442_v20, %v448_v33 }
  0xb5   :  { %v686_v48 = vmax.f32 %v684_v41, %v450_v43 }
  0xb6   :  { %v518_v29 = vpop.xlane.xlu1 %517 }
  0xb7   :  { %v524_v39 = vmul.f32 0.01, %v518_v29  ;;  %vm522_vm8 = vcmp.gt.f32.partialorder %v518_v29, 0.0 }
  0xb9   :  { %v445_v28 = vpop.xlane.xlu0 %444  ;;  %v526_v46 = vsel %vm522_vm8, %v518_v29, %v524_v39  ;;  %v789_v39 = vld [vmem:[#allocation7 + $0x8] sm:$0x1] }
  0xba   :  { %v449_v45 = vmul.f32 0.01, %v445_v28  ;;  %vm447_vm10 = vcmp.gt.f32.partialorder %v445_v28, 0.0  ;;  %v688_v53 = vmax.f32 %v686_v48, %v526_v46  ;;  %v791_v48 = vld [vmem:[#allocation7 + $0x18] sm:$0x1] }
  0xbc   :  { %v451_v54 = vsel %vm447_vm10, %v445_v28, %v449_v45 }
  0xbd   :  { %v521_v37 = vpop.xlane.xlu2 %520  ;;  %v687_v61 = vmax.f32 %v685_v56, %v451_v54  ;;  %v793_v56 = vld [vmem:[#allocation7 + $0x28] sm:$0x1] }
  0xbe   :  { %v525_v55 = vmul.f32 0.01, %v521_v37  ;;  %vm523_vm12 = vcmp.gt.f32.partialorder %v521_v37, 0.0 }
  0xc0   :  { %v527_v63 = vsel %vm523_vm12, %v521_v37, %v525_v55 }
  0xc1   :  { %v689_v4 = vmax.f32 %v687_v61, %v527_v63 }
  0xc2   :  { %v597_v51 = vpop.xlane.xlu1 %596 }
  0xc3   :  { %v601_v58 = vmul.f32 0.01, %v597_v51  ;;  %vm599_vm13 = vcmp.gt.f32.partialorder %v597_v51, 0.0 }
  0xc5   :  { %v1707_v1 = vsel %vm599_vm13, %v597_v51, %v601_v58 }
  0xc6   :  { %v594_v49 = vpop.xlane.xlu0 %593  ;;  %v691_v10 = vmax.f32 %v689_v4, %v1707_v1  ;;  %v854_v4 = vld [vmem:[#allocation7 + $0x1] sm:$0x1] }
  0xc7   :  { %vm598_vm11 = vcmp.gt.f32.partialorder %v594_v49, 0.0  ;;  %v600_v52 = vmul.f32 0.01, %v594_v49 }
  0xc9   :  { %v602_v57 = vsel %vm598_vm11, %v594_v49, %v600_v52  ;;  %v822_v49 = vrot.slane %v790_v42, 6  ;;  %v792_v52 = vld [vmem:[#allocation7 + $0x20] sm:$0x1]  ;;  %v802_v42 = vld [vmem:[#allocation7 + $0x70] sm:$0x1] }
  0xca   :  { %v690_v59 = vmax.f32 %v688_v53, %v602_v57  ;;  %v670_v60 = vpop.xlane.xlu2 %669  ;;  %v826_v58 = vrot.slane %v792_v52, 4 }
  0xcb   :  { %vm674_vm14 = vcmp.gt.f32.partialorder %v670_v60, 0.0  ;;  %v676_v62 = vmul.f32 0.01, %v670_v60 }
  0xcd   :  { %v678_v0 = vsel %vm674_vm14, %v670_v60, %v676_v62 }
  0xce   :  { %v692_v2 = vmax.f32 %v690_v59, %v678_v0  ;;  %v673_v3 = vpop.xlane.xlu0 %672  ;;  %v856_v59 = vld [vmem:[#allocation7 + $0x11] sm:$0x1] }
  0xcf   :  { %vm675_vm15 = vcmp.gt.f32.partialorder %v673_v3, 0.0  ;;  %v677_v5 = vmul.f32 0.01, %v673_v3 }
  0xd0   :  { %v694_v6 = vsub.f32 %v1688_v22, %v692_v2  ;;  %v700_v7 = vsub.f32 %v1686_v21, %v692_v2  ;;  %v706_v8 = vsub.f32 %v1692_v25, %v692_v2  ;;  %v712_v9 = vsub.f32 %v374_v32, %v692_v2 }
  0xd1   :  { %v718_v11 = vsub.f32 %v450_v43, %v692_v2  ;;  %v724_v30 = vsub.f32 %v526_v46, %v692_v2  ;;  %v1713_v14 = vsel %vm675_vm15, %v673_v3, %v677_v5  ;;  %v730_v16 = vsub.f32 %v602_v57, %v692_v2  ;;  %v797_v3 = vld [vmem:[#allocation7 + $0x48] sm:$0x1] }
  0xd2   :  { %v696_v12 = vmul.f32 1.442695, %v694_v6  ;;  %v702_v13 = vmul.f32 1.442695, %v700_v7  ;;  %v708_v15 = vmul.f32 1.442695, %v706_v8  ;;  %v693_v17 = vmax.f32 %v691_v10, %v1713_v14 }
  0xd3   :  { %v714_v18 = vmul.f32 1.442695, %v712_v9  ;;  %v720_v19 = vmul.f32 1.442695, %v718_v11  ;;  %v726_v22 = vmul.f32 1.442695, %v724_v30  ;;  %v736_v38 = vsub.f32 %v678_v0, %v692_v2 }
  0xd4   :  { %1356 = vpow2.f32 %v696_v12  ;;  %v695_v20 = vsub.f32 %v1697_v35, %v693_v17  ;;  %v701_v21 = vsub.f32 %v1695_v34, %v693_v17  ;;  %v707_v23 = vsub.f32 %v1701_v44, %v693_v17  ;;  %v855_v44 = vld [vmem:[#allocation7 + $0x9] sm:$0x1]  ;;  %v794_v7 = vld [vmem:[#allocation7 + $0x30] sm:$0x1]  ;;  %v796_v12 = vld [vmem:[#allocation7 + $0x40] sm:$0x1] }
  0xd5   :  { %1358 = vpow2.f32 %v702_v13  ;;  %v713_v24 = vsub.f32 %v1703_v47, %v693_v17  ;;  %v732_v25 = vmul.f32 1.442695, %v730_v16  ;;  %v719_v26 = vsub.f32 %v451_v54, %v693_v17  ;;  %v788_v47 = vld [vmem:[#allocation7] sm:$0x1]  ;;  %v798_v8 = vld [vmem:[#allocation7 + $0x50] sm:$0x1] }
  0xd6   :  { %1360 = vpow2.f32 %v708_v15  ;;  %v725_v27 = vsub.f32 %v527_v63, %v693_v17  ;;  %v698_v28 = vmul.f32 1.442695, %v695_v20  ;;  %v704_v29 = vmul.f32 1.442695, %v701_v21  ;;  %v799_v13 = vld [vmem:[#allocation7 + $0x58] sm:$0x1] }
  0xd7   :  { %1362 = vpow2.f32 %v714_v18  ;;  %v738_v32 = vmul.f32 1.442695, %v736_v38  ;;  %v710_v33 = vmul.f32 1.442695, %v707_v23  ;;  %v716_v34 = vmul.f32 1.442695, %v713_v24 }
  0xd8   :  { %1364 = vpow2.f32 %v720_v19  ;;  %v722_v36 = vmul.f32 1.442695, %v719_v26  ;;  %v728_v37 = vmul.f32 1.442695, %v725_v27  ;;  %v731_v41 = vsub.f32 %v1707_v1, %v693_v17  ;;  %v795_v19 = vld [vmem:[#allocation7 + $0x38] sm:$0x1] }
  0xd9   :  { %1366 = vpow2.f32 %v726_v22  ;;  %v820_v43 = vrot.slane %v789_v39, 7  ;;  %v737_v46 = vsub.f32 %v1713_v14, %v693_v17  ;;  %v824_v54 = vrot.slane %v791_v48, 5  ;;  %v800_v20 = vld [vmem:[#allocation7 + $0x60] sm:$0x1]  ;;  %v857_v21 = vld [vmem:[#allocation7 + $0x19] sm:$0x1] }
  0xda   :  { %v1720_v31 = vpop.eup %1356  ;;  %1368 = vpow2.f32 %v732_v25  ;;  %v734_v62 = vmul.f32 1.442695, %v731_v41  ;;  %v886_v0 = vrot.slane %v855_v44, 7  ;;  %v828_v9 = vrot.slane %v793_v56, 3  ;;  %v801_v23 = vld [vmem:[#allocation7 + $0x68] sm:$0x1] }
  0xdb   :  { %v1722_v35 = vpop.eup %1358  ;;  %1370 = vpow2.f32 %v698_v28  ;;  %v821_v53 = vsel %vm97_vm0, %v820_v43, %v788_v47  ;;  %v740_v2 = vmul.f32 1.442695, %v737_v46  ;;  %v888_v10 = vrot.slane %v856_v59, 6  ;;  %v858_v46 = vld [vmem:[#allocation7 + $0x21] sm:$0x1] }
  0xdc   :  { %v742_v40 = vadd.f32 %v1722_v35, %v1720_v31  ;;  %v1727_v45 = vpop.eup %1360  ;;  %1372 = vpow2.f32 %v704_v29  ;;  %v823_v57 = vsel %vm100_vm1, %v822_v49, %v821_v53  ;;  %v834_v14 = vrot.slane %v797_v3, 7  ;;  %v803_v53 = vld [vmem:[#allocation7 + $0x78] sm:$0x1]  ;;  %v864_v56 = vld [vmem:[#allocation7 + $0x51] sm:$0x1] }
  0xdd   :  { %v1730_v50 = vpop.eup %1362  ;;  %1374 = vpow2.f32 %v738_v32  ;;  %v825_v63 = vsel %vm103_vm2, %v824_v54, %v823_v57  ;;  %v836_v15 = vrot.slane %v798_v8, 6  ;;  %v887_v22 = vsel %vm97_vm0, %v886_v0, %v854_v4  ;;  %v863_v54 = vld [vmem:[#allocation7 + $0x49] sm:$0x1]  ;;  %v860_v4 = vld [vmem:[#allocation7 + $0x31] sm:$0x1] }
  0xde   :  { %v744_v51 = vadd.f32 %v1727_v45, %v742_v40  ;;  %v1734_v55 = vpop.eup %1364  ;;  %1376 = vpow2.f32 %v710_v33  ;;  %v827_v30 = vsel %vm106_vm3, %v826_v58, %v825_v63  ;;  %v830_v24 = vrot.slane %v794_v7, 2 }
  0xdf   :  { %v1737_v60 = vpop.eup %1366  ;;  %1378 = vpow2.f32 %v716_v34  ;;  %v835_v25 = vsel %vm97_vm0, %v834_v14, %v796_v12  ;;  %v838_v26 = vrot.slane %v799_v13, 5  ;;  %v840_v27 = vrot.slane %v800_v20, 4  ;;  %v861_v12 = vld [vmem:[#allocation7 + $0x39] sm:$0x1] }
  0xe0   :  { %v746_v61 = vadd.f32 %v1730_v50, %v744_v51  ;;  %v1741_v1 = vpop.eup %1368  ;;  %1380 = vpow2.f32 %v722_v36  ;;  %v829_v32 = vsel %vm109_vm4, %v828_v9, %v827_v30  ;;  %v837_v33 = vsel %vm100_vm1, %v836_v15, %v835_v25  ;;  %v859_v51 = vld [vmem:[#allocation7 + $0x29] sm:$0x1]  ;;  %v924_v25 = vld [vmem:[#allocation7 + $0x12] sm:$0x1] }
  0xe1   :  { %v1743_v5 = vpop.eup %1370  ;;  %1382 = vpow2.f32 %v728_v37  ;;  %v839_v36 = vsel %vm103_vm2, %v838_v26, %v837_v33  ;;  %v889_v37 = vsel %vm100_vm1, %v888_v10, %v887_v22  ;;  %v890_v39 = vrot.slane %v857_v21, 5  ;;  %v867_v15 = vld [vmem:[#allocation7 + $0x69] sm:$0x1] }
  0xe2   :  { %v748_v6 = vadd.f32 %v1734_v55, %v746_v61  ;;  %v1746_v11 = vpop.eup %1372  ;;  %1384 = vpow2.f32 %v734_v62  ;;  %v832_v43 = vrot.slane %v795_v19, 1  ;;  %v842_v44 = vrot.slane %v801_v23, 3  ;;  %v865_v61 = vld [vmem:[#allocation7 + $0x59] sm:$0x1]  ;;  %v866_v62 = vld [vmem:[#allocation7 + $0x61] sm:$0x1] }
  0xe3   :  { %v1749_v16 = vpop.eup %1374  ;;  %v743_v18 = vadd.f32 %v1746_v11, %v1743_v5  ;;  %1386 = vpow2.f32 %v740_v2  ;;  %v831_v48 = vsel %vm112_vm5, %v830_v24, %v829_v32  ;;  %v841_v49 = vsel %vm106_vm3, %v840_v27, %v839_v36  ;;  %v923_v24 = vld [vmem:[#allocation7 + $0xa] sm:$0x1] }
  0xe4   :  { %v750_v17 = vadd.f32 %v1737_v60, %v748_v6  ;;  %v1755_v38 = vpop.eup %1376  ;;  %v891_v57 = vsel %vm103_vm2, %v890_v39, %v889_v37  ;;  %v844_v59 = vrot.slane %v802_v42, 2  ;;  %v892_v63 = vrot.slane %v858_v46, 4  ;;  %v862_v6 = vld [vmem:[#allocation7 + $0x41] sm:$0x1]  ;;  %v869_v46 = vld [vmem:[#allocation7 + $0x79] sm:$0x1] }
  0xe5   :  { %v745_v29 = vadd.f32 %v1755_v38, %v743_v18  ;;  %v1762_v34 = vpop.eup %1378  ;;  %v1781_v2 = vsel %vm115_vm6, %v832_v43, %v831_v48  ;;  %v843_v3 = vsel %vm109_vm4, %v842_v44, %v841_v49  ;;  %v894_v7 = vrot.slane %v859_v51, 3  ;;  %v922_v43 = vld [vmem:[#allocation7 + $0x2] sm:$0x1]  ;;  %v925_v44 = vld [vmem:[#allocation7 + $0x1a] sm:$0x1] }
  0xe6   :  { %v752_v28 = vadd.f32 %v1741_v1, %v750_v17  ;;  %v1770_v47 = vpop.eup %1380  ;;  %v893_v13 = vsel %vm106_vm3, %v892_v63, %v891_v57  ;;  %v900_v30 = vrot.slane %v863_v54, 7  ;;  %v846_v14 = vrot.slane %v803_v53, 1  ;;  %v928_v63 = vld [vmem:[#allocation7 + $0x32] sm:$0x1] }
  0xe7   :  { %v747_v41 = vadd.f32 %v1762_v34, %v745_v29  ;;  %v1774_v52 = vpop.eup %1382  ;;  %v902_v17 = vrot.slane %v864_v56, 6  ;;  %v904_v18 = vrot.slane %v865_v61, 5  ;;  %v906_v19 = vrot.slane %v866_v62, 4  ;;  %v868_v29 = vld [vmem:[#allocation7 + $0x71] sm:$0x1] }
  0xe8   :  { %v1767_v40 = vadd.f32 %v1749_v16, %v752_v28  ;;  %v1784_v8 = vpop.eup %1384  ;;  %v896_v22 = vrot.slane %v860_v4, 2  ;;  %v901_v23 = vsel %vm97_vm0, %v900_v30, %v862_v6  ;;  %v845_v28 = vsel %vm112_vm5, %v844_v59, %v843_v3  ;;  %v927_v59 = vld [vmem:[#allocation7 + $0x2a] sm:$0x1]  ;;  %v932_v30 = vld [vmem:[#allocation7 + $0x52] sm:$0x1] }
  0xe9   :  { %v749_v58 = vadd.f32 %v1770_v47, %v747_v41  ;;  %v1789_v20 = vpop.eup %1386  ;;  %v895_v32 = vsel %vm109_vm4, %v894_v7, %v893_v13  ;;  %v903_v33 = vsel %vm100_vm1, %v902_v17, %v901_v23  ;;  %v908_v42 = vrot.slane %v867_v15, 3  ;;  %v929_v7 = vld [vmem:[#allocation7 + $0x3a] sm:$0x1]  ;;  %v936_v37 = vld [vmem:[#allocation7 + $0x72] sm:$0x1] }
  0xea   :  { %1388 = vrcp.f32 %v1767_v40  ;;  %v767_v0 = vand.u32 2147483648, %v1767_v40  ;;  %v765_v9 = vand.u32 2147483647, %v1767_v40  ;;  %vm761_vm8 = vweird.f32 %v1767_v40 }
  0xeb   :  { %v751_v10 = vadd.f32 %v1774_v52, %v749_v58  ;;  %v905_v41 = vsel %vm103_vm2, %v904_v18, %v903_v33  ;;  %v898_v48 = vrot.slane %v861_v12, 1  ;;  %v954_v51 = vrot.slane %v923_v24, 7  ;;  %v926_v58 = vld [vmem:[#allocation7 + $0x22] sm:$0x1] }
  0xec   :  { %v768_v27 = vor.u32 1.1754944e-38, %v767_v0  ;;  %vm1798_vm9 = vcmp.eq.f32.partialorder %v765_v9, 8.507059e+37  ;;  %v907_v49 = vsel %vm106_vm3, %v906_v19, %v905_v41  ;;  %v956_v53 = vrot.slane %v924_v25, 6  ;;  %v931_v9 = vld [vmem:[#allocation7 + $0x4a] sm:$0x1] }
  0xed   :  { %v753_v21 = vadd.f32 %v1784_v8, %v751_v10  ;;  %v1809_v56 = vsel %vm115_vm6, %v846_v14, %v845_v28  ;;  %v897_v57 = vsel %vm112_vm5, %v896_v22, %v895_v32  ;;  %v910_v62 = vrot.slane %v868_v29, 2  ;;  %v933_v19 = vld [vmem:[#allocation7 + $0x5a] sm:$0x1]  ;;  %v934_v25 = vld [vmem:[#allocation7 + $0x62] sm:$0x1] }
  0xee   :  { %v955_v0 = vsel %vm97_vm0, %v954_v51, %v922_v43  ;;  %v958_v3 = vrot.slane %v925_v44, 5  ;;  %v909_v6 = vsel %vm109_vm4, %v908_v42, %v907_v49  ;;  %v899_v13 = vsel %vm115_vm6, %v898_v48, %v897_v57  ;;  %v935_v41 = vld [vmem:[#allocation7 + $0x6a] sm:$0x1]  ;;  %v1004_v48 = vld [vmem:[#allocation7 + $0x73] sm:$0x1] }
  0xef   :  { %v1803_v39 = vadd.f32 %v1789_v20, %v753_v21  ;;  %v957_v10 = vsel %vm100_vm1, %v956_v53, %v955_v0  ;;  %v960_v15 = vrot.slane %v926_v58, 4  ;;  %v912_v18 = vrot.slane %v869_v46, 1  ;;  %v937_v0 = vld [vmem:[#allocation7 + $0x7a] sm:$0x1] }
  0xf0   :  { %v1389_v26 = vpop.eup %1388  ;;  %v959_v14 = vsel %vm103_vm2, %v958_v3, %v957_v10  ;;  %v962_v21 = vrot.slane %v927_v59, 3  ;;  %v964_v22 = vrot.slane %v928_v63, 2  ;;  %v911_v24 = vsel %vm112_vm5, %v910_v62, %v909_v6  ;;  %v992_v62 = vld [vmem:[#allocation7 + $0x13] sm:$0x1] }
  0xf1   :  { %v757_v36 = vmul.f32 %v1389_v26, %v1767_v40  ;;  %1390 = vrcp.f32 %v1803_v39  ;;  %v782_v61 = vand.u32 2147483648, %v1803_v39  ;;  %vm762_vm10 = vweird.f32 %v1389_v26 }
  0xf2   :  { %v780_v12 = vand.u32 2147483647, %v1803_v39  ;;  %vm763_vm11 = vmor %vm761_vm8, %vm762_vm10  ;;  %vm776_vm12 = vweird.f32 %v1803_v39  ;;  %v961_v28 = vsel %vm106_vm3, %v960_v15, %v959_v14  ;;  %v968_v29 = vrot.slane %v931_v9, 7  ;;  %v995_v15 = vld [vmem:[#allocation7 + $0x2b] sm:$0x1] }
  0xf3   :  { %v758_v54 = vsub.f32 1.0, %v757_v36  ;;  %v1823_v23 = vor.u32 1.1754944e-38, %v782_v61  ;;  %v930_v36 = vld [vmem:[#allocation7 + $0x42] sm:$0x1]  ;;  %v963_v42 = vsel %vm109_vm4, %v962_v21, %v961_v28  ;;  %v966_v43 = vrot.slane %v929_v7, 1 }
  0xf4   :  { %v970_v44 = vrot.slane %v932_v30, 6  ;;  %vm1833_vm13 = vcmp.eq.f32.partialorder %v780_v12, 8.507059e+37  ;;  %v965_v49 = vsel %vm112_vm5, %v964_v22, %v963_v42  ;;  %v972_v51 = vrot.slane %v933_v19, 5  ;;  %v991_v61 = vld [vmem:[#allocation7 + $0xb] sm:$0x1] }
  0xf5   :  { %v759_v4 = vmul.f32 %v1389_v26, %v758_v54  ;;  %v913_v54 = vsel %vm115_vm6, %v912_v18, %v911_v24  ;;  %v969_v58 = vsel %vm97_vm0, %v968_v29, %v930_v36  ;;  %v976_v59 = vrot.slane %v935_v41, 3  ;;  %v990_v12 = vld [vmem:[#allocation7 + $0x3] sm:$0x1]  ;;  %v996_v22 = vld [vmem:[#allocation7 + $0x33] sm:$0x1] }
  0xf6   :  { %v971_v3 = vsel %vm100_vm1, %v970_v44, %v969_v58  ;;  %v978_v10 = vrot.slane %v936_v37, 2  ;;  %v994_v30 = vld [vmem:[#allocation7 + $0x23] sm:$0x1]  ;;  %v980_v21 = vrot.slane %v937_v0, 1  ;;  %v999_v24 = vld [vmem:[#allocation7 + $0x4b] sm:$0x1] }
  0xf7   :  { %v760_v17 = vadd.f32 %v1389_v26, %v759_v4  ;;  %v1391_v32 = vpop.eup %1390  ;;  %v993_v4 = vld [vmem:[#allocation7 + $0x1b] sm:$0x1]  ;;  %v973_v9 = vsel %vm103_vm2, %v972_v51, %v971_v3  ;;  %v998_v42 = vld [vmem:[#allocation7 + $0x43] sm:$0x1]  ;;  %v1036_v51 = vrot.slane %v999_v24, 7 }
  0xf8   :  { %v772_v46 = vmul.f32 %v1391_v32, %v1803_v39  ;;  %vm777_vm14 = vweird.f32 %v1391_v32  ;;  %v997_v28 = vld [vmem:[#allocation7 + $0x3b] sm:$0x1] }
  0xf9   :  { %v764_v33 = vsel %vm763_vm11, %v1389_v26, %v760_v17  ;;  %v1022_v17 = vrot.slane %v991_v61, 7  ;;  %vm778_vm15 = vmor %vm776_vm12, %vm777_vm14  ;;  %v1001_v37 = vld [vmem:[#allocation7 + $0x5b] sm:$0x1]  ;;  %v1037_v61 = vsel %vm97_vm0, %v1036_v51, %v998_v42 }
  0xfa   :  { %v1830_v40 = vsel %vm1798_vm9, %v768_v27, %v764_v33  ;;  %v974_v27 = vrot.slane %v934_v25, 4  ;;  %v773_v57 = vsub.f32 1.0, %v772_v46  ;;  %v1026_v25 = vrot.slane %v993_v4, 5 }
  0xfb   :  { %v786_v26 = vmul.f32 %v1720_v31, %v1830_v40  ;;  %v852_v53 = vmul.f32 %v1722_v35, %v1830_v40  ;;  %v1846_v63 = vmul.f32 %v1749_v16, %v1830_v40  ;;  %v920_v31 = vmul.f32 %v1727_v45, %v1830_v40 }
  0xfc   :  { %v967_v35 = vsel %vm115_vm6, %v966_v43, %v965_v49  ;;  %v774_v6 = vmul.f32 %v1391_v32, %v773_v57  ;;  %v975_v16 = vsel %vm106_vm3, %v974_v27, %v973_v9  ;;  %v1024_v45 = vrot.slane %v992_v62, 6  ;;  %v1000_v43 = vld [vmem:[#allocation7 + $0x53] sm:$0x1]  ;;  %v1002_v27 = vld [vmem:[#allocation7 + $0x63] sm:$0x1] }
  0xfd   :  { %v850_v7 = vmul.f32 %v1781_v2, %v786_v26  ;;  %v916_v14 = vmul.f32 %v899_v13, %v852_v53  ;;  %v977_v19 = vsel %vm109_vm4, %v976_v59, %v975_v16  ;;  %v984_v2 = vmul.f32 %v967_v35, %v920_v31  ;;  %v1003_v59 = vld [vmem:[#allocation7 + $0x6b] sm:$0x1]  ;;  %v1058_v9 = vld [vmem:[#allocation7 + $0x4] sm:$0x1]  ;;  %v1061_v16 = vld [vmem:[#allocation7 + $0x1c] sm:$0x1] }
  0xfe   :  { %v775_v18 = vadd.f32 %v1391_v32, %v774_v6  ;;  %v988_v13 = vmul.f32 %v1730_v50, %v1830_v40  ;;  %v1023_v29 = vsel %vm97_vm0, %v1022_v17, %v990_v12  ;;  %v1028_v33 = vrot.slane %v994_v30, 4 }
  0xff   :  { %v979_v41 = vsel %vm112_vm5, %v978_v10, %v977_v19  ;;  %v1025_v44 = vsel %vm100_vm1, %v1024_v45, %v1023_v29  ;;  %v1030_v46 = vrot.slane %v995_v15, 3  ;;  %v1032_v50 = vrot.slane %v996_v22, 2  ;;  %v1059_v10 = vld [vmem:[#allocation7 + $0xc] sm:$0x1] }
 0x100   :  { %v779_v36 = vsel %vm778_vm15, %v1391_v32, %v775_v18  ;;  %v1027_v49 = vsel %vm103_vm2, %v1026_v25, %v1025_v44  ;;  %v918_v53 = vadd.f32 %v916_v14, %v850_v7  ;;  %v1034_v57 = vrot.slane %v997_v28, 1  ;;  %v1062_v18 = vld [vmem:[#allocation7 + $0x24] sm:$0x1]  ;;  %v1063_v19 = vld [vmem:[#allocation7 + $0x2c] sm:$0x1] }
 0x101   :  { %v1867_v39 = vsel %vm1833_vm13, %v1823_v23, %v779_v36  ;;  %v981_v58 = vsel %vm115_vm6, %v980_v21, %v979_v41  ;;  %v1029_v23 = vsel %vm106_vm3, %v1028_v33, %v1027_v49  ;;  %v1038_v62 = vrot.slane %v1000_v43, 6  ;;  %v1064_v25 = vld [vmem:[#allocation7 + $0x34] sm:$0x1]  ;;  %v1067_v36 = vld [vmem:[#allocation7 + $0x4c] sm:$0x1] }
 0x102   :  { %v787_v26 = vmul.f32 %v1743_v5, %v1867_v39  ;;  %v853_v32 = vmul.f32 %v1746_v11, %v1867_v39  ;;  %v921_v5 = vmul.f32 %v1755_v38, %v1867_v39  ;;  %v1005_v11 = vld [vmem:[#allocation7 + $0x7b] sm:$0x1]  ;;  %v1031_v35 = vsel %vm109_vm4, %v1030_v46, %v1029_v23  ;;  %v1069_v44 = vld [vmem:[#allocation7 + $0x5c] sm:$0x1]  ;;  %v1070_v46 = vld [vmem:[#allocation7 + $0x64] sm:$0x1] }
 0x103   :  { %v1033_v3 = vsel %vm112_vm5, %v1032_v50, %v1031_v35  ;;  %v1039_v4 = vsel %vm100_vm1, %v1038_v62, %v1037_v61  ;;  %v1040_v6 = vrot.slane %v1001_v37, 5  ;;  %v1042_v7 = vrot.slane %v1002_v27, 4 }
 0x104   :  { %v851_v31 = vmul.f32 %v1809_v56, %v787_v26  ;;  %v917_v0 = vmul.f32 %v913_v54, %v853_v32  ;;  %v986_v12 = vadd.f32 %v984_v2, %v918_v53  ;;  %v1035_v30 = vsel %vm115_vm6, %v1034_v57, %v1033_v3  ;;  %v1060_v54 = vld [vmem:[#allocation7 + $0x14] sm:$0x1]  ;;  %v1065_v2 = vld [vmem:[#allocation7 + $0x3c] sm:$0x1]  ;;  %v1066_v32 = vld [vmem:[#allocation7 + $0x44] sm:$0x1] }
 0x105   :  { %v1044_v14 = vrot.slane %v1003_v59, 3  ;;  %v1046_v56 = vrot.slane %v1004_v48, 2  ;;  %v989_v38 = vmul.f32 %v1762_v34, %v1867_v39  ;;  %v1041_v17 = vsel %vm103_vm2, %v1040_v6, %v1039_v4  ;;  %v1068_v34 = vld [vmem:[#allocation7 + $0x54] sm:$0x1]  ;;  %v1071_v53 = vld [vmem:[#allocation7 + $0x6c] sm:$0x1] }
 0x106   :  { %v919_v15 = vadd.f32 %v917_v0, %v851_v31  ;;  %v1048_v45 = vrot.slane %v1005_v11, 1  ;;  %v985_v21 = vmul.f32 %v981_v58, %v921_v5  ;;  %v1043_v22 = vsel %vm106_vm3, %v1042_v7, %v1041_v17  ;;  %v1072_v57 = vld [vmem:[#allocation7 + $0x74] sm:$0x1]  ;;  %v1073_v58 = vld [vmem:[#allocation7 + $0x7c] sm:$0x1] }
 0x107   :  { %v1052_v24 = vmul.f32 %v1035_v30, %v988_v13  ;;  %v1090_v28 = vrot.slane %v1059_v10, 7  ;;  %v1045_v29 = vsel %vm109_vm4, %v1044_v14, %v1043_v22  ;;  %v1891_v33 = vmul.f32 %v1734_v55, %v1830_v40  ;;  %v1126_v5 = vld [vmem:[#allocation7 + $0x5] sm:$0x1]  ;;  %v1127_v11 = vld [vmem:[#allocation7 + $0xd] sm:$0x1] }
 0x108   :  { %v1092_v41 = vrot.slane %v1060_v54, 6  ;;  %v1094_v42 = vrot.slane %v1061_v16, 5  ;;  %v1047_v43 = vsel %vm112_vm5, %v1046_v56, %v1045_v29  ;;  %v1096_v13 = vrot.slane %v1062_v18, 4  ;;  %v1128_v6 = vld [vmem:[#allocation7 + $0x15] sm:$0x1] }
 0x109   :  { %v1091_v49 = vsel %vm97_vm0, %v1090_v28, %v1058_v9  ;;  %v1098_v50 = vrot.slane %v1063_v19, 3  ;;  %v987_v51 = vadd.f32 %v985_v21, %v919_v15  ;;  %v1049_v26 = vsel %vm115_vm6, %v1048_v45, %v1047_v43  ;;  %v1129_v7 = vld [vmem:[#allocation7 + $0x1d] sm:$0x1]  ;;  %v1130_v56 = vld [vmem:[#allocation7 + $0x25] sm:$0x1] }
 0x10a   :  { %v1093_v55 = vsel %vm100_vm1, %v1092_v41, %v1091_v49  ;;  %v1100_v37 = vrot.slane %v1064_v25, 2  ;;  %v1899_v27 = vmul.f32 %v1770_v47, %v1867_v39  ;;  %v1104_v48 = vrot.slane %v1067_v36, 7  ;;  %v1131_v54 = vld [vmem:[#allocation7 + $0x2d] sm:$0x1]  ;;  %v1133_v45 = vld [vmem:[#allocation7 + $0x3d] sm:$0x1] }
 0x10b   :  { %v1095_v59 = vsel %vm103_vm2, %v1094_v42, %v1093_v55  ;;  %v1106_v23 = vrot.slane %v1068_v34, 6  ;;  %v1102_v62 = vrot.slane %v1065_v2, 1  ;;  %v1108_v31 = vrot.slane %v1069_v44, 5  ;;  %v1134_v22 = vld [vmem:[#allocation7 + $0x45] sm:$0x1] }
 0x10c   :  { %v1097_v61 = vsel %vm106_vm3, %v1096_v13, %v1095_v59  ;;  %v1110_v0 = vrot.slane %v1070_v46, 4  ;;  %v1053_v35 = vmul.f32 %v1049_v26, %v989_v38  ;;  %v1105_v4 = vsel %vm97_vm0, %v1104_v48, %v1066_v32  ;;  %v1132_v38 = vld [vmem:[#allocation7 + $0x35] sm:$0x1]  ;;  %v1137_v29 = vld [vmem:[#allocation7 + $0x5d] sm:$0x1] }
 0x10d   :  { %v1099_v3 = vsel %vm109_vm4, %v1098_v50, %v1097_v61  ;;  %v1112_v47 = vrot.slane %v1071_v53, 3  ;;  %v1054_v9 = vadd.f32 %v1052_v24, %v986_v12  ;;  %v1107_v30 = vsel %vm100_vm1, %v1106_v23, %v1105_v4  ;;  %v1135_v12 = vld [vmem:[#allocation7 + $0x4d] sm:$0x1]  ;;  %v1136_v28 = vld [vmem:[#allocation7 + $0x55] sm:$0x1] }
 0x10e   :  { %v1101_v10 = vsel %vm112_vm5, %v1100_v37, %v1099_v3  ;;  %v1114_v14 = vrot.slane %v1072_v57, 2  ;;  %v1055_v16 = vadd.f32 %v1053_v35, %v987_v51  ;;  %v1109_v15 = vsel %vm103_vm2, %v1108_v31, %v1107_v30  ;;  %v1138_v44 = vld [vmem:[#allocation7 + $0x65] sm:$0x1]  ;;  %v1139_v46 = vld [vmem:[#allocation7 + $0x6d] sm:$0x1] }
 0x10f   :  { %v1116_v17 = vrot.slane %v1073_v58, 1  ;;  %v1158_v18 = vrot.slane %v1127_v11, 7  ;;  %v1103_v19 = vsel %vm115_vm6, %v1102_v62, %v1101_v10  ;;  %v1111_v21 = vsel %vm106_vm3, %v1110_v0, %v1109_v15  ;;  %v1140_v55 = vld [vmem:[#allocation7 + $0x75] sm:$0x1]  ;;  %v1141_v37 = vld [vmem:[#allocation7 + $0x7d] sm:$0x1] }
 0x110   :  { %v1160_v24 = vrot.slane %v1128_v6, 6  ;;  %v1162_v25 = vrot.slane %v1129_v7, 5  ;;  %v1113_v2 = vsel %vm109_vm4, %v1112_v47, %v1111_v21  ;;  %v1164_v34 = vrot.slane %v1130_v56, 4  ;;  %v1194_v62 = vld [vmem:[#allocation7 + $0x6] sm:$0x1] }
 0x111   :  { %v1159_v36 = vsel %vm97_vm0, %v1158_v18, %v1126_v5  ;;  %v1166_v41 = vrot.slane %v1131_v54, 3  ;;  %v1115_v42 = vsel %vm112_vm5, %v1114_v14, %v1113_v2  ;;  %v1124_v43 = vmul.f32 %v1737_v60, %v1830_v40  ;;  %v1195_v31 = vld [vmem:[#allocation7 + $0xe] sm:$0x1]  ;;  %v1196_v35 = vld [vmem:[#allocation7 + $0x16] sm:$0x1] }
 0x112   :  { %v1161_v49 = vsel %vm100_vm1, %v1160_v24, %v1159_v36  ;;  %v1168_v13 = vrot.slane %v1132_v38, 2  ;;  %v1117_v50 = vsel %vm115_vm6, %v1116_v17, %v1115_v42  ;;  %v1170_v26 = vrot.slane %v1133_v45, 1  ;;  %v1197_v3 = vld [vmem:[#allocation7 + $0x1e] sm:$0x1]  ;;  %v1198_v4 = vld [vmem:[#allocation7 + $0x26] sm:$0x1] }
 0x113   :  { %v1163_v51 = vsel %vm103_vm2, %v1162_v25, %v1161_v49  ;;  %v1172_v32 = vrot.slane %v1135_v12, 7  ;;  %v1120_v53 = vmul.f32 %v1103_v19, %v1891_v33  ;;  %v1174_v58 = vrot.slane %v1136_v28, 6  ;;  %v1199_v30 = vld [vmem:[#allocation7 + $0x2e] sm:$0x1]  ;;  %v1200_v14 = vld [vmem:[#allocation7 + $0x36] sm:$0x1] }
 0x114   :  { %v1165_v57 = vsel %vm106_vm3, %v1164_v34, %v1163_v51  ;;  %v1176_v59 = vrot.slane %v1137_v29, 5  ;;  %v1178_v23 = vrot.slane %v1138_v44, 4  ;;  %v1180_v61 = vrot.slane %v1139_v46, 3  ;;  %v1201_v54 = vld [vmem:[#allocation7 + $0x3e] sm:$0x1] }
 0x115   :  { %v1167_v60 = vsel %vm109_vm4, %v1166_v41, %v1165_v57  ;;  %v1173_v48 = vsel %vm97_vm0, %v1172_v32, %v1134_v22  ;;  %v1121_v0 = vmul.f32 %v1117_v50, %v1899_v27  ;;  %v1925_v5 = vmul.f32 %v1774_v52, %v1867_v39  ;;  %v1203_v15 = vld [vmem:[#allocation7 + $0x4e] sm:$0x1]  ;;  %v1202_v45 = vld [vmem:[#allocation7 + $0x46] sm:$0x1]  ;;  %v1204_v18 = vld [vmem:[#allocation7 + $0x56] sm:$0x1] }
 0x116   :  { %v1169_v33 = vsel %vm112_vm5, %v1168_v13, %v1167_v60  ;;  %v1175_v11 = vsel %vm100_vm1, %v1174_v58, %v1173_v48  ;;  %v1122_v47 = vadd.f32 %v1120_v53, %v1054_v9  ;;  %v1182_v10 = vrot.slane %v1140_v55, 2  ;;  %v1205_v24 = vld [vmem:[#allocation7 + $0x5e] sm:$0x1]  ;;  %v1207_v36 = vld [vmem:[#allocation7 + $0x6e] sm:$0x1] }
 0x117   :  { %v1171_v6 = vsel %vm115_vm6, %v1170_v26, %v1169_v33  ;;  %v1177_v7 = vsel %vm103_vm2, %v1176_v59, %v1175_v11  ;;  %v1931_v27 = vadd.f32 %v1121_v0, %v1055_v16  ;;  %v1184_v56 = vrot.slane %v1141_v37, 1  ;;  %v1206_v16 = vld [vmem:[#allocation7 + $0x66] sm:$0x1]  ;;  %v1208_v34 = vld [vmem:[#allocation7 + $0x76] sm:$0x1] }
 0x118   :  { %v1179_v52 = vsel %vm106_vm3, %v1178_v23, %v1177_v7  ;;  %v1226_v17 = vrot.slane %v1195_v31, 7  ;;  %v1228_v9 = vrot.slane %v1196_v35, 6  ;;  %v1230_v19 = vrot.slane %v1197_v3, 5  ;;  %v1263_v49 = vld [vmem:[#allocation7 + $0xf] sm:$0x1] }
 0x119   :  { %v1181_v38 = vsel %vm109_vm4, %v1180_v61, %v1179_v52  ;;  %v1232_v21 = vrot.slane %v1198_v4, 4  ;;  %v1188_v22 = vmul.f32 %v1171_v6, %v1124_v43  ;;  %v1192_v12 = vmul.f32 %v1741_v1, %v1830_v40  ;;  %v1209_v43 = vld [vmem:[#allocation7 + $0x7e] sm:$0x1]  ;;  %v1264_v32 = vld [vmem:[#allocation7 + $0x17] sm:$0x1] }
 0x11a   :  { %v1227_v25 = vsel %vm97_vm0, %v1226_v17, %v1194_v62  ;;  %v1234_v2 = vrot.slane %v1199_v30, 3  ;;  %v1183_v28 = vsel %vm112_vm5, %v1182_v10, %v1181_v38  ;;  %v1941_v29 = vmul.f32 %v1784_v8, %v1867_v39  ;;  %v1265_v8 = vld [vmem:[#allocation7 + $0x1f] sm:$0x1]  ;;  %v1262_v58 = vld [vmem:[#allocation7 + $0x7] sm:$0x1] }
 0x11b   :  { %v1229_v41 = vsel %vm100_vm1, %v1228_v9, %v1227_v25  ;;  %v1236_v42 = vrot.slane %v1200_v14, 2  ;;  %v1238_v1 = vrot.slane %v1201_v54, 1  ;;  %v1240_v40 = vrot.slane %v1203_v15, 7  ;;  %v1266_v59 = vld [vmem:[#allocation7 + $0x27] sm:$0x1] }
 0x11c   :  { %v1231_v44 = vsel %vm103_vm2, %v1230_v19, %v1229_v41  ;;  %v1242_v46 = vrot.slane %v1204_v18, 6  ;;  %v1190_v13 = vadd.f32 %v1188_v22, %v1122_v47  ;;  %v1244_v51 = vrot.slane %v1205_v24, 5  ;;  %v1267_v61 = vld [vmem:[#allocation7 + $0x2f] sm:$0x1]  ;;  %v1268_v62 = vld [vmem:[#allocation7 + $0x37] sm:$0x1] }
 0x11d   :  { %v1233_v50 = vsel %vm106_vm3, %v1232_v21, %v1231_v44  ;;  %v1246_v26 = vrot.slane %v1206_v16, 4  ;;  %v1185_v53 = vsel %vm115_vm6, %v1184_v56, %v1183_v28  ;;  %v1241_v37 = vsel %vm97_vm0, %v1240_v40, %v1202_v45  ;;  %v1269_v11 = vld [vmem:[#allocation7 + $0x3f] sm:$0x1]  ;;  %v1271_v6 = vld [vmem:[#allocation7 + $0x4f] sm:$0x1] }
 0x11e   :  { %v1235_v55 = vsel %vm109_vm4, %v1234_v2, %v1233_v50  ;;  %v1248_v57 = vrot.slane %v1207_v36, 3  ;;  %v1243_v48 = vsel %vm100_vm1, %v1242_v46, %v1241_v37  ;;  %v1250_v23 = vrot.slane %v1208_v34, 2  ;;  %v1272_v7 = vld [vmem:[#allocation7 + $0x57] sm:$0x1]  ;;  %v1273_v52 = vld [vmem:[#allocation7 + $0x5f] sm:$0x1] }
 0x11f   :  { %v1237_v60 = vsel %vm112_vm5, %v1236_v42, %v1235_v55  ;;  %v1294_v31 = vrot.slane %v1263_v49, 7  ;;  %v1245_v33 = vsel %vm103_vm2, %v1244_v51, %v1243_v48  ;;  %v1296_v35 = vrot.slane %v1264_v32, 6  ;;  %v1274_v56 = vld [vmem:[#allocation7 + $0x67] sm:$0x1]  ;;  %v1275_v9 = vld [vmem:[#allocation7 + $0x6f] sm:$0x1] }
 0x120   :  { %v1239_v0 = vsel %vm115_vm6, %v1238_v1, %v1237_v60  ;;  %v1298_v3 = vrot.slane %v1265_v8, 5  ;;  %v1247_v4 = vsel %vm106_vm3, %v1246_v26, %v1245_v33  ;;  %v1252_v47 = vrot.slane %v1209_v43, 1  ;;  %v1270_v18 = vld [vmem:[#allocation7 + $0x47] sm:$0x1]  ;;  %v1276_v24 = vld [vmem:[#allocation7 + $0x77] sm:$0x1] }
 0x121   :  { %v1295_v10 = vsel %vm97_vm0, %v1294_v31, %v1262_v58  ;;  %v1300_v30 = vrot.slane %v1266_v59, 4  ;;  %v1249_v14 = vsel %vm109_vm4, %v1248_v57, %v1247_v4  ;;  %v1302_v15 = vrot.slane %v1267_v61, 3  ;;  %v1277_v36 = vld [vmem:[#allocation7 + $0x7f] sm:$0x1] }
 0x122   :  { %v1297_v54 = vsel %vm100_vm1, %v1296_v35, %v1295_v10  ;;  %v1304_v17 = vrot.slane %v1268_v62, 2  ;;  %v1251_v38 = vsel %vm112_vm5, %v1250_v23, %v1249_v14  ;;  %v1256_v45 = vmul.f32 %v1239_v0, %v1192_v12 }
 0x123   :  { %v1299_v19 = vsel %vm103_vm2, %v1298_v3, %v1297_v54  ;;  %v1306_v21 = vrot.slane %v1269_v11, 1  ;;  %v1189_v22 = vmul.f32 %v1185_v53, %v1925_v5  ;;  %v1308_v25 = vrot.slane %v1271_v6, 7 }
 0x124   :  { %v1301_v16 = vsel %vm106_vm3, %v1300_v30, %v1299_v19  ;;  %v1310_v2 = vrot.slane %v1272_v7, 6  ;;  %v1258_v28 = vadd.f32 %v1256_v45, %v1190_v13  ;;  %v1312_v41 = vrot.slane %v1273_v52, 5 }
 0x125   :  { %v1303_v34 = vsel %vm109_vm4, %v1302_v15, %v1301_v16  ;;  %v1314_v42 = vrot.slane %v1274_v56, 4  ;;  %v1253_v12 = vsel %vm115_vm6, %v1252_v47, %v1251_v38  ;;  %v1309_v44 = vsel %vm97_vm0, %v1308_v25, %v1270_v18 }
 0x126   :  { %v1305_v43 = vsel %vm112_vm5, %v1304_v17, %v1303_v34  ;;  %v1316_v1 = vrot.slane %v1275_v9, 3  ;;  %v1191_v5 = vadd.f32 %v1189_v22, %v1931_v27  ;;  %v1311_v46 = vsel %vm100_vm1, %v1310_v2, %v1309_v44 }
 0x127   :  { %v1307_v40 = vsel %vm115_vm6, %v1306_v21, %v1305_v43  ;;  %v1318_v49 = vrot.slane %v1276_v24, 2  ;;  %v1313_v13 = vsel %vm103_vm2, %v1312_v41, %v1311_v46  ;;  %v1320_v50 = vrot.slane %v1277_v36, 1 }
 0x128   :  { %v1324_v51 = vmul.f32 %v1307_v40, %v1846_v63  ;;  %v1261_v26 = vmul.f32 %v1789_v20, %v1867_v39  ;;  %v1257_v32 = vmul.f32 %v1253_v12, %v1941_v29  ;;  %v1315_v8 = vsel %vm106_vm3, %v1314_v42, %v1313_v13 }
 0x129   :  { %v1317_v53 = vsel %vm109_vm4, %v1316_v1, %v1315_v8 }
 0x12a   :  { %v1326_v27 = vadd.f32 %v1324_v51, %v1258_v28  ;;  %v1259_v55 = vadd.f32 %v1257_v32, %v1191_v5  ;;  %v1319_v37 = vsel %vm112_vm5, %v1318_v49, %v1317_v53 }
 0x12b   :  { %v1321_v57 = vsel %vm115_vm6, %v1320_v50, %v1319_v37 }
 0x12c   :  { %1328 = vst.msk [vmem:[#allocation8] sm:$0xff] %vm135_vm7, %v1326_v27  ;;  %v1325_v20 = vmul.f32 %v1321_v57, %v1261_v26 }
 0x12e   :  { %v1327_v63 = vadd.f32 %v1325_v20, %v1259_v55 }
 0x130   :  { %1329 = vst.msk [vmem:[#allocation8 + $0x8] sm:$0xff] %vm135_vm7, %v1327_v63 }
 0x131   :  { %1342 = dma.vmem_to_hbm [thread:$0]  %s1335_s27, 256, %s1337_s30, [#allocation4], %s1495_s20, %s1495_s20, %s1496_s21  }
 0x132   :  { %1492 = dma.done.wait [#allocation4], 256  }
 0x133   :  { %1493 = vsyncadd [#allocation4], 4294967040 }
 0x134   :  { %1347 = vsyncpa [#allocation3], 1 }
 0x135   :  { %1348 = vsyncpa [#allocation6], 1 }
 0x136   :  { %1349 = vsyncpa [#allocation4], 1 }

</bundles_post_ra>
